<compile_context>
chip_gen: v7x
topology: tpu7x:2x2x1
jax: 0.10.0
libtpu: 0.0.40
codegen_flags: <defaults>
</compile_context>

<pallas_src>
import jax
import jax.numpy as jnp
from jax import lax
from jax.experimental import pallas as pl
from jax.experimental.pallas import tpu as pltpu

# ---- MSModel hyper-parameters (small but consistent with the module) --------
HIDDEN = 32           # model.config.hidden_size
N_LAYER = 2           # model.config.n_layer
N_HEAD = 2            # model.config.n_head
HEAD_DIM = HIDDEN // N_HEAD
CODEBOOK_NUM = 10     # codebook_num
SEQ_LEN = 5           # n (prefix length)
BATCH = 5
SEQ = 8               # token sequence length
TAU = 0.07
GAMMA = 2.0           # FocalLoss gamma (statically 2 -> plain square, no pow)
EPS = 1e-8            # F.cosine_similarity eps
DEC_COLS = HIDDEN * N_LAYER          # 64 (decoder output width)
OUT_LANES = 128
RIGHT_COLS = OUT_LANES - DEC_COLS    # 64 (loss scalars live here, row 0)

VMEM = pltpu.MemorySpace.VMEM

# ---------------------------------------------------------------------------
# Parameter slab: every weight/bias padded to a multiple of 8 rows and packed
# into one [SLAB_ROWS, 128] f32 buffer.  Static, 8-aligned row offsets.
# ---------------------------------------------------------------------------
def _round8(r):
    return (r + 7) // 8 * 8


_PARAM_SHAPES = [
    ("codebook",      (CODEBOOK_NUM, HIDDEN)),
    ("seq_embedding", (SEQ_LEN, HIDDEN)),
    ("dec_w1", (HIDDEN, 2 * HIDDEN)),        ("dec_b1", (1, 2 * HIDDEN)),
    ("dec_w2", (2 * HIDDEN, 4 * HIDDEN)),    ("dec_b2", (1, 4 * HIDDEN)),
    ("dec_w3", (4 * HIDDEN, DEC_COLS)),      ("dec_b3", (1, DEC_COLS)),
    ("pred_w1", (HIDDEN, 2 * HIDDEN)),       ("pred_b1", (1, 2 * HIDDEN)),
    ("pred_w2", (2 * HIDDEN, 4 * HIDDEN)),   ("pred_b2", (1, 4 * HIDDEN)),
    ("pred_w3", (4 * HIDDEN, 2 * HIDDEN)),   ("pred_b3", (1, 2 * HIDDEN)),
    ("pred_w4", (2 * HIDDEN, CODEBOOK_NUM)), ("pred_b4", (1, CODEBOOK_NUM)),
]
_PARAM_SHAPE_MAP = dict(_PARAM_SHAPES)
_PARAM_OFFSETS = {}
_off = 0
for _name, (_r, _c) in _PARAM_SHAPES:
    _PARAM_OFFSETS[_name] = _off
    _off += _round8(_r)
SLAB_ROWS = _off          # 592
SLAB_LANES = 128


def pack_params(params):
    """Build the single lane-dense parameter slab (done once, outside the kernel)."""
    slab = jnp.zeros((SLAB_ROWS, SLAB_LANES), jnp.float32)
    for name, (r, c) in _PARAM_SHAPES:
        off = _PARAM_OFFSETS[name]
        slab = slab.at[off:off + r, 0:c].set(params[name].astype(jnp.float32))
    return slab


# ---------------------------------------------------------------------------
# Single fused kernel.
# ---------------------------------------------------------------------------
def _ms_fused_kernel(masks_ref, acts_ref, slab_ref, out_ref):
    f32 = jnp.float32
    twoB, S = masks_ref.shape
    B = twoB // 2
    H = acts_ref.shape[1]
    K = CODEBOOK_NUM
    n = SEQ_LEN
    BS = B * S

    def param(name):
        r, c = _PARAM_SHAPE_MAP[name]
        off = _PARAM_OFFSETS[name]
        return slab_ref[off:off + r, 0:c]          # static slice -> single load

    # ---- fused first-True-position on one [2B,S] tile ------------------------
    # rows 0..B-1: cond_attention_mask != 1 ; rows B..2B-1: labels != -100
    # (torch.argmax(mask.int(), dim=1): first True, 0 if none)
    m = masks_ref[...]
    r2 = lax.broadcasted_iota(jnp.int32, (2 * B, S), 0)
    is_cond = r2 < B
    pred = (is_cond & (m != 1)) | (jnp.logical_not(is_cond) & (m != -100))
    s_iota = lax.broadcasted_iota(jnp.int32, (2 * B, S), 1)
    p = jnp.min(jnp.where(pred, s_iota, S), axis=1, keepdims=True)
    pos = jnp.where(p == S, 0, p)                                       # [2B,1]

    # ---- fused row gather: one selection matmul against the stacked acts -----
    # acts rows 0..BS-1 = cond_hidden flat, rows BS..2BS-1 = out_hidden flat;
    # flat target for row i is simply i*S + pos[i] (both halves).
    rr = lax.broadcasted_iota(jnp.int32, (2 * B, 2 * BS), 0)
    cc = lax.broadcasted_iota(jnp.int32, (2 * B, 2 * BS), 1)
    sel = (cc == rr * S + pos).astype(f32)                              # [2B,2BS]
    gathered = jnp.dot(sel, acts_ref[...], preferred_element_type=f32)  # [2B,H]
    encoder_out = gathered[0:B, :]                                      # [B,H]
    last_hidden = gathered[B:2 * B, :]                                  # [B,H]

    # ---- codebook 'mean' init (first call): row 0 <- encoder_out[0] ----------
    # TODO(synk): the stateful one-shot init (codebook_initialized_count) is not
    # reproduced; the init is recomputed each call and never written back.
    cb = param("codebook")                                              # [K,H]
    k_row = lax.broadcasted_iota(jnp.int32, (K, H), 0)
    cb = jnp.where(k_row == 0,
                   jnp.broadcast_to(encoder_out[0:1, :], (K, H)), cb)

    # ---- vector quantization (argmin of squared distance) --------------------
    cross = lax.dot_general(encoder_out, cb, (((1,), (1,)), ((), ())),
                            preferred_element_type=f32)                 # [B,K]
    e_sq = jnp.sum(encoder_out * encoder_out, axis=-1, keepdims=True)   # [B,1]
    ones_row = jnp.ones((1, H), f32)
    c_sq = lax.dot_general(ones_row, cb * cb, (((1,), (1,)), ((), ())),
                           preferred_element_type=f32)                  # [1,K]
    dist_sq = jnp.maximum(e_sq + c_sq - 2.0 * cross, 0.0)               # [B,K]
    k_iota = lax.broadcasted_iota(jnp.int32, (B, K), 1)
    min_d = jnp.min(dist_sq, axis=-1, keepdims=True)
    index = jnp.min(jnp.where(dist_sq <= min_d, k_iota, K),
                    axis=-1, keepdims=True)                             # [B,1]
    onehot = (k_iota == index).astype(f32)                              # [B,K]
    quantized = jnp.dot(onehot, cb, preferred_element_type=f32)         # [B,H]

    diff = quantized - encoder_out
    mse = jnp.sum(diff * diff, axis=(0, 1), keepdims=True) * (1.0 / (B * H))

    # ---- InfoNCE contrastive loss --------------------------------------------
    # TODO(synk): negatives = every code not selected by ANY batch element
    # (unique()-based mask in the reference; codebook_num=10 <= 20 so the
    # randperm sub-sampling is a no-op).
    negmask = 1.0 - jnp.max(onehot, axis=0, keepdims=True)              # [1,K]
    q_sq = jnp.sum(quantized * quantized, axis=-1, keepdims=True)       # [B,1]
    cos_pos = (jnp.sum(encoder_out * quantized, axis=-1, keepdims=True)
               * lax.rsqrt(jnp.maximum(e_sq * q_sq, EPS * EPS)))        # [B,1]
    cos_neg = cross * lax.rsqrt(jnp.maximum(e_sq * c_sq, EPS * EPS))    # [B,K]
    den_pos = jnp.exp(cos_pos * (1.0 / TAU))
    den_neg = jnp.sum(jnp.exp(cos_neg * (1.0 / TAU)) * negmask,
                      axis=-1, keepdims=True)
    contrastive = jnp.log(den_pos + den_neg) - cos_pos * (1.0 / TAU)    # [B,1]
    vae_loss = mse + jnp.sum(contrastive, axis=(0, 1), keepdims=True) * (1.0 / B)

    # ---- straight-through + decoder MLP (8 padded rows -> dense output) ------
    # pass_grad(quantized, encoder_out) forward value is exactly encoder_out.
    # TODO(synk): nn.Dropout(0.1) layers omitted (eval-mode identity).
    dec_in8 = gathered[0:8, :]                 # rows 0..B-1 valid, 5..7 padding
    h = jnp.tanh(jnp.dot(dec_in8, param("dec_w1"), preferred_element_type=f32)
                 + param("dec_b1"))
    h = jnp.tanh(jnp.dot(h, param("dec_w2"), preferred_element_type=f32)
                 + param("dec_b2"))
    dec8 = (jnp.dot(h, param("dec_w3"), preferred_element_type=f32)
            + param("dec_b3"))                                          # [8,64]
    rdec = lax.broadcasted_iota(jnp.int32, (8, DEC_COLS), 0)
    dec8 = jnp.where(rdec < B, dec8, 0.0)      # zero the padding rows

    # ---- predicter head, batched over the n prefix positions -----------------
    # Row i of the [B*n, .] tile corresponds to (b = i//n, j = i%n); built with
    # comparison-based selection matrices (no integer div on the VPU).
    Bn = B * n
    se = param("seq_embedding")                                         # [n,H]
    rb = lax.broadcasted_iota(jnp.int32, (Bn, B), 0)
    cbn = lax.broadcasted_iota(jnp.int32, (Bn, B), 1)
    selB = ((rb >= cbn * n) & (rb < (cbn + 1) * n)).astype(f32)         # [Bn,B]
    b_idx = jnp.sum((rb >= (cbn + 1) * n).astype(jnp.int32),
                    axis=1, keepdims=True)                              # i//n
    rj = lax.broadcasted_iota(jnp.int32, (Bn, n), 0)
    cj = lax.broadcasted_iota(jnp.int32, (Bn, n), 1)
    selJ = ((rj - b_idx * n) == cj).astype(f32)                         # [Bn,n]

    lhp = (jnp.dot(selB, last_hidden, preferred_element_type=f32)
           + jnp.dot(selJ, se, preferred_element_type=f32))             # [Bn,H]
    h = jnp.maximum(jnp.dot(lhp, param("pred_w1"), preferred_element_type=f32)
                    + param("pred_b1"), 0.0)
    h = jnp.maximum(jnp.dot(h, param("pred_w2"), preferred_element_type=f32)
                    + param("pred_b2"), 0.0)
    h = jnp.maximum(jnp.dot(h, param("pred_w3"), preferred_element_type=f32)
                    + param("pred_b3"), 0.0)
    z = (jnp.dot(h, param("pred_w4"), preferred_element_type=f32)
         + param("pred_b4"))                                            # [Bn,K]

    # focal loss (gamma=2); targets = VQ code index repeated over seq_len.
    # TODO(synk): reference passes a [B] target to F.cross_entropy on [B*n,K]
    # logits (batch mismatch); intended behaviour (per my_get_prompt) is one
    # code target per prefix position.
    onehot_rep = jnp.dot(selB, onehot, preferred_element_type=f32)      # [Bn,K]
    zmax = jnp.max(z, axis=-1, keepdims=True)
    lse = zmax + jnp.log(jnp.sum(jnp.exp(z - zmax), axis=-1, keepdims=True))
    ce = lse - jnp.sum(z * onehot_rep, axis=-1, keepdims=True)          # [Bn,1]
    pt = jnp.exp(-ce)
    omp = 1.0 - pt
    code_loss = jnp.sum(omp * omp * ce, axis=(0, 1), keepdims=True) * (1.0 / Bn)

    # ---- single lane-dense [8,128] output tile --------------------------------
    r_r = lax.broadcasted_iota(jnp.int32, (8, RIGHT_COLS), 0)
    c_r = lax.broadcasted_iota(jnp.int32, (8, RIGHT_COLS), 1)
    right = (jnp.where((r_r == 0) & (c_r == 0), 1.0, 0.0) * vae_loss
             + jnp.where((r_r == 0) & (c_r == 1), 1.0, 0.0) * code_loss)
    out_ref[...] = jnp.concatenate([dec8, right], axis=1)               # [8,128]


def _ms_fused(param_slab, masks, acts):
    return pl.pallas_call(
        _ms_fused_kernel,
        out_shape=jax.ShapeDtypeStruct((8, OUT_LANES), jnp.float32),
        in_specs=[pl.BlockSpec(memory_space=VMEM)] * 3,
        out_specs=pl.BlockSpec(memory_space=VMEM),
    )(masks, acts, param_slab)


# ---------------------------------------------------------------------------
# Parameters (deterministic, matching MSModel.__init__ shapes)
# ---------------------------------------------------------------------------
def init_params(key):
    keys = jax.random.split(key, 10)
    H, K, n = HIDDEN, CODEBOOK_NUM, SEQ_LEN

    def linear(k, fan_in, fan_out):
        kw, kb = jax.random.split(k)
        bound = 1.0 / jnp.sqrt(jnp.float32(fan_in))
        w = jax.random.uniform(kw, (fan_in, fan_out), jnp.float32, -bound, bound)
        b = jax.random.uniform(kb, (1, fan_out), jnp.float32, -bound, bound)
        return w, b

    p = {}
    p['codebook'] = jax.random.uniform(keys[0], (K, H), jnp.float32, -1.0 / K, 1.0 / K)
    p['seq_embedding'] = jax.random.normal(keys[1], (n, H), jnp.float32)
    p['dec_w1'], p['dec_b1'] = linear(keys[2], H, 2 * H)
    p['dec_w2'], p['dec_b2'] = linear(keys[3], 2 * H, 4 * H)
    p['dec_w3'], p['dec_b3'] = linear(keys[4], 4 * H, H * N_LAYER)
    p['pred_w1'], p['pred_b1'] = linear(keys[5], H, 2 * H)
    p['pred_w2'], p['pred_b2'] = linear(keys[6], 2 * H, 4 * H)
    p['pred_w3'], p['pred_b3'] = linear(keys[7], 4 * H, 2 * H)
    p['pred_w4'], p['pred_b4'] = linear(keys[8], 2 * H, K)
    return p


# ---------------------------------------------------------------------------
# MSModel.forward (first call, init_method='mean', centrifugal=True).
# The wrapped HF GPT is an external pretrained model: its last hidden states
# (for both calls) and its LM loss are taken as inputs.
# ---------------------------------------------------------------------------
def ms_model_forward(param_slab, input_ids, attention_mask, labels,
                     cond_attention_mask, cond_hidden, out_hidden, model_loss):
    B, S, H = cond_hidden.shape

    masks = jnp.concatenate([cond_attention_mask.astype(jnp.int32),
                             labels.astype(jnp.int32)], axis=0)          # [2B,S]
    acts = jnp.concatenate([cond_hidden.reshape(B * S, H),
                            out_hidden.reshape(B * S, H)], axis=0)       # [2BS,H]

    out = _ms_fused(param_slab, masks, acts)
    dec_out = out[0:B, 0:DEC_COLS]
    vae_loss = out[0, DEC_COLS]
    code_loss = out[0, DEC_COLS + 1]

    # past_key_values plumbing (pure glue feeding the external HF LM; dead code
    # under jit since the second model call is not reproduced here).
    pkv = dec_out.reshape(-1, SEQ_LEN, N_LAYER, N_HEAD, HEAD_DIM)
    pkv = jnp.transpose(pkv, (2, 0, 3, 1, 4))
    pkv = jnp.repeat(pkv[:, None], 2, axis=1)
    past_key_values = [pkv[l] for l in range(N_LAYER)]
    prefix_attention_mask = jnp.ones((attention_mask.shape[0], SEQ_LEN),
                                     attention_mask.dtype)
    full_attention_mask = jnp.concatenate((prefix_attention_mask, attention_mask), axis=1)
    # TODO(synk): second self.model(...) call (HF GPT with past_key_values) is an
    # external pretrained transformer; model_loss / out_hidden are passed in.
    del past_key_values, full_attention_mask, input_ids

    return model_loss, vae_loss, code_loss


if __name__ == "__main__":
    key = jax.random.PRNGKey(0)
    pkey, dkey = jax.random.split(key)
    params = init_params(pkey)
    param_slab = pack_params(params)
    keys = jax.random.split(dkey, 4)

    input_ids = jax.random.randint(keys[0], (BATCH, SEQ), 0, 100, dtype=jnp.int32)
    attention_mask = jnp.ones((BATCH, SEQ), jnp.int32)
    labels = jnp.where(jnp.arange(SEQ)[None, :] < 3, -100,
                       jax.random.randint(keys[1], (BATCH, SEQ), 0, 100, dtype=jnp.int32))
    valid_len = jnp.array([8, 6, 7, 5, 8], jnp.int32)[:BATCH]
    cond_attention_mask = (jnp.arange(SEQ)[None, :] < valid_len[:, None]).astype(jnp.int32)
    cond_hidden = jax.random.normal(keys[2], (BATCH, SEQ, HIDDEN), jnp.float32)
    out_hidden = jax.random.normal(keys[3], (BATCH, SEQ, HIDDEN), jnp.float32)
    model_loss = jnp.float32(0.0)  # TODO(synk): would come from the external HF LM

    fwd = jax.jit(ms_model_forward)
    m_loss, v_loss, c_loss = fwd(param_slab, input_ids, attention_mask, labels,
                                 cond_attention_mask, cond_hidden, out_hidden, model_loss)
    jax.block_until_ready((m_loss, v_loss, c_loss))
    print("KERNEL_OK")
</pallas_src>

<mosaic_0001>
module attributes {stable_mosaic.version = 11 : i64} {
  func.func @_ms_fused_kernel(%arg0: memref<10x8xi32, #tpu.memory_space<vmem>>, %arg1: memref<80x32xf32, #tpu.memory_space<vmem>>, %arg2: memref<592x128xf32, #tpu.memory_space<vmem>>, %arg3: memref<8x128xf32, #tpu.memory_space<vmem>>) attributes {dimension_semantics = [], scalar_prefetch = 0 : i64, scratch_operands = 0 : i64, tpu.core_type = #tpu.core_type<tc>} {
    %c0 = arith.constant 0 : index
    %c0_0 = arith.constant 0 : index
    %0 = vector.load %arg0[%c0, %c0_0] : memref<10x8xi32, #tpu.memory_space<vmem>>, vector<10x8xi32>
    %1 = tpu.iota {dimensions = array<i32: 0>} : vector<10x8xi32>
    %c5_i32 = arith.constant 5 : i32
    %2 = vector.broadcast %c5_i32 : i32 to vector<10x8xi32>
    %3 = arith.cmpi slt, %1, %2 : vector<10x8xi32>
    %c1_i32 = arith.constant 1 : i32
    %4 = vector.broadcast %c1_i32 : i32 to vector<10x8xi32>
    %5 = arith.cmpi ne, %0, %4 : vector<10x8xi32>
    %6 = arith.andi %3, %5 : vector<10x8xi1>
    %cst = arith.constant dense<true> : vector<10x8xi1>
    %7 = arith.xori %3, %cst : vector<10x8xi1>
    %c-100_i32 = arith.constant -100 : i32
    %8 = vector.broadcast %c-100_i32 : i32 to vector<10x8xi32>
    %9 = arith.cmpi ne, %0, %8 : vector<10x8xi32>
    %10 = arith.andi %7, %9 : vector<10x8xi1>
    %11 = arith.ori %6, %10 : vector<10x8xi1>
    %12 = tpu.iota {dimensions = array<i32: 1>} : vector<10x8xi32>
    %c8_i32 = arith.constant 8 : i32
    %13 = vector.broadcast %c8_i32 : i32 to vector<10x8xi32>
    %14 = arith.select %11, %12, %13 : vector<10x8xi1>, vector<10x8xi32>
    %cst_1 = arith.constant dense<2147483647> : vector<10xi32>
    %15 = vector.multi_reduction <minsi>, %14, %cst_1 [1] : vector<10x8xi32> to vector<10xi32>
    %16 = vector.shape_cast %15 : vector<10xi32> to vector<10x1xi32>
    %c8_i32_2 = arith.constant 8 : i32
    %17 = vector.broadcast %c8_i32_2 : i32 to vector<10x1xi32>
    %18 = arith.cmpi eq, %16, %17 : vector<10x1xi32>
    %c0_i32 = arith.constant 0 : i32
    %19 = vector.broadcast %c0_i32 : i32 to vector<10x1xi32>
    %20 = arith.select %18, %19, %16 : vector<10x1xi1>, vector<10x1xi32>
    %21 = tpu.iota {dimensions = array<i32: 0>} : vector<10x80xi32>
    %22 = tpu.iota {dimensions = array<i32: 1>} : vector<10x80xi32>
    %c8_i32_3 = arith.constant 8 : i32
    %23 = vector.broadcast %c8_i32_3 : i32 to vector<10x80xi32>
    %24 = arith.muli %21, %23 : vector<10x80xi32>
    %25 = vector.broadcast %20 : vector<10x1xi32> to vector<10x80xi32>
    %26 = arith.addi %24, %25 : vector<10x80xi32>
    %27 = arith.cmpi eq, %22, %26 : vector<10x80xi32>
    %28 = arith.extui %27 : vector<10x80xi1> to vector<10x80xi32>
    %29 = arith.sitofp %28 : vector<10x80xi32> to vector<10x80xf32>
    %c0_4 = arith.constant 0 : index
    %c0_5 = arith.constant 0 : index
    %30 = vector.load %arg1[%c0_4, %c0_5] : memref<80x32xf32, #tpu.memory_space<vmem>>, vector<80x32xf32>
    %cst_6 = arith.constant dense<0.000000e+00> : vector<10x32xf32>
    %31 = tpu.matmul %29, %30, %cst_6 {dimension_numbers = #tpu.dot_dimension_numbers<[1], [0], [0], [1], [0, 0, 1, 1], [], []>} : vector<10x80xf32>, vector<80x32xf32>, vector<10x32xf32> -> vector<10x32xf32>
    %32 = vector.extract_strided_slice %31 {offsets = [0, 0], sizes = [5, 32], strides = [1, 1]} : vector<10x32xf32> to vector<5x32xf32>
    %33 = vector.extract_strided_slice %31 {offsets = [5, 0], sizes = [5, 32], strides = [1, 1]} : vector<10x32xf32> to vector<5x32xf32>
    %c0_7 = arith.constant 0 : index
    %c0_8 = arith.constant 0 : index
    %34 = vector.load %arg2[%c0_7, %c0_8] : memref<592x128xf32, #tpu.memory_space<vmem>>, vector<10x32xf32>
    %35 = tpu.iota {dimensions = array<i32: 0>} : vector<10x32xi32>
    %c0_i32_9 = arith.constant 0 : i32
    %36 = vector.broadcast %c0_i32_9 : i32 to vector<10x32xi32>
    %37 = arith.cmpi eq, %35, %36 : vector<10x32xi32>
    %38 = vector.extract_strided_slice %32 {offsets = [0, 0], sizes = [1, 32], strides = [1, 1]} : vector<5x32xf32> to vector<1x32xf32>
    %39 = vector.shape_cast %38 : vector<1x32xf32> to vector<1x32xf32>
    %40 = vector.broadcast %39 : vector<1x32xf32> to vector<10x32xf32>
    %41 = arith.select %37, %40, %34 : vector<10x32xi1>, vector<10x32xf32>
    %cst_10 = arith.constant dense<0.000000e+00> : vector<5x10xf32>
    %42 = tpu.matmul %32, %41, %cst_10 {dimension_numbers = #tpu.dot_dimension_numbers<[1], [1], [0], [0], [0, 0, 1, 0], [], []>} : vector<5x32xf32>, vector<10x32xf32>, vector<5x10xf32> -> vector<5x10xf32>
    %43 = arith.mulf %32, %32 : vector<5x32xf32>
    %cst_11 = arith.constant dense<0.000000e+00> : vector<5xf32>
    %44 = vector.multi_reduction <add>, %43, %cst_11 [1] : vector<5x32xf32> to vector<5xf32>
    %45 = vector.shape_cast %44 : vector<5xf32> to vector<5x1xf32>
    %cst_12 = arith.constant 1.000000e+00 : f32
    %46 = vector.broadcast %cst_12 : f32 to vector<1x32xf32>
    %47 = arith.mulf %41, %41 : vector<10x32xf32>
    %cst_13 = arith.constant dense<0.000000e+00> : vector<1x10xf32>
    %48 = tpu.matmul %46, %47, %cst_13 {dimension_numbers = #tpu.dot_dimension_numbers<[1], [1], [0], [0], [0, 0, 1, 0], [], []>} : vector<1x32xf32>, vector<10x32xf32>, vector<1x10xf32> -> vector<1x10xf32>
    %49 = vector.broadcast %45 : vector<5x1xf32> to vector<5x10xf32>
    %50 = vector.broadcast %48 : vector<1x10xf32> to vector<5x10xf32>
    %51 = arith.addf %49, %50 : vector<5x10xf32>
    %cst_14 = arith.constant 2.000000e+00 : f32
    %52 = vector.broadcast %cst_14 : f32 to vector<5x10xf32>
    %53 = arith.mulf %52, %42 : vector<5x10xf32>
    %54 = arith.subf %51, %53 : vector<5x10xf32>
    %cst_15 = arith.constant 0.000000e+00 : f32
    %55 = vector.broadcast %cst_15 : f32 to vector<5x10xf32>
    %56 = arith.maximumf %54, %55 : vector<5x10xf32>
    %57 = tpu.iota {dimensions = array<i32: 1>} : vector<5x10xi32>
    %cst_16 = arith.constant dense<0x7F800000> : vector<5xf32>
    %58 = vector.multi_reduction <minimumf>, %56, %cst_16 [1] : vector<5x10xf32> to vector<5xf32>
    %59 = vector.shape_cast %58 : vector<5xf32> to vector<5x1xf32>
    %60 = vector.broadcast %59 : vector<5x1xf32> to vector<5x10xf32>
    %61 = arith.cmpf ole, %56, %60 : vector<5x10xf32>
    %c10_i32 = arith.constant 10 : i32
    %62 = vector.broadcast %c10_i32 : i32 to vector<5x10xi32>
    %63 = arith.select %61, %57, %62 : vector<5x10xi1>, vector<5x10xi32>
    %cst_17 = arith.constant dense<2147483647> : vector<5xi32>
    %64 = vector.multi_reduction <minsi>, %63, %cst_17 [1] : vector<5x10xi32> to vector<5xi32>
    %65 = vector.shape_cast %64 : vector<5xi32> to vector<5x1xi32>
    %66 = vector.broadcast %65 : vector<5x1xi32> to vector<5x10xi32>
    %67 = arith.cmpi eq, %57, %66 : vector<5x10xi32>
    %68 = arith.extui %67 : vector<5x10xi1> to vector<5x10xi32>
    %69 = arith.sitofp %68 : vector<5x10xi32> to vector<5x10xf32>
    %cst_18 = arith.constant dense<0.000000e+00> : vector<5x32xf32>
    %70 = tpu.matmul %69, %41, %cst_18 {dimension_numbers = #tpu.dot_dimension_numbers<[1], [0], [0], [1], [0, 0, 1, 1], [], []>} : vector<5x10xf32>, vector<10x32xf32>, vector<5x32xf32> -> vector<5x32xf32>
    %71 = arith.subf %70, %32 : vector<5x32xf32>
    %72 = arith.mulf %71, %71 : vector<5x32xf32>
    %73 = vector.shape_cast %72 : vector<5x32xf32> to vector<1x5x32xf32>
    %cst_19 = arith.constant dense<0.000000e+00> : vector<1xf32>
    %74 = vector.multi_reduction <add>, %73, %cst_19 [1, 2] : vector<1x5x32xf32> to vector<1xf32>
    %75 = vector.shape_cast %74 : vector<1xf32> to vector<1x1x1xf32>
    %76 = vector.extract %75[0, 0, 0] : f32 from vector<1x1x1xf32>
    %77 = vector.broadcast %76 : f32 to vector<1x1xf32>
    %cst_20 = arith.constant 6.250000e-03 : f32
    %78 = vector.broadcast %cst_20 : f32 to vector<1x1xf32>
    %79 = arith.mulf %77, %78 : vector<1x1xf32>
    %cst_21 = arith.constant dense<0xFF800000> : vector<10xf32>
    %80 = vector.multi_reduction <maximumf>, %69, %cst_21 [0] : vector<5x10xf32> to vector<10xf32>
    %81 = vector.shape_cast %80 : vector<10xf32> to vector<1x10xf32>
    %cst_22 = arith.constant 1.000000e+00 : f32
    %82 = vector.broadcast %cst_22 : f32 to vector<1x10xf32>
    %83 = arith.subf %82, %81 : vector<1x10xf32>
    %84 = arith.mulf %70, %70 : vector<5x32xf32>
    %cst_23 = arith.constant dense<0.000000e+00> : vector<5xf32>
    %85 = vector.multi_reduction <add>, %84, %cst_23 [1] : vector<5x32xf32> to vector<5xf32>
    %86 = vector.shape_cast %85 : vector<5xf32> to vector<5x1xf32>
    %87 = arith.mulf %32, %70 : vector<5x32xf32>
    %cst_24 = arith.constant dense<0.000000e+00> : vector<5xf32>
    %88 = vector.multi_reduction <add>, %87, %cst_24 [1] : vector<5x32xf32> to vector<5xf32>
    %89 = vector.shape_cast %88 : vector<5xf32> to vector<5x1xf32>
    %90 = arith.mulf %45, %86 : vector<5x1xf32>
    %cst_25 = arith.constant 1.000000e-16 : f32
    %91 = vector.broadcast %cst_25 : f32 to vector<5x1xf32>
    %92 = arith.maximumf %90, %91 : vector<5x1xf32>
    %93 = math.rsqrt %92 : vector<5x1xf32>
    %94 = arith.mulf %89, %93 : vector<5x1xf32>
    %95 = vector.broadcast %45 : vector<5x1xf32> to vector<5x10xf32>
    %96 = vector.broadcast %48 : vector<1x10xf32> to vector<5x10xf32>
    %97 = arith.mulf %95, %96 : vector<5x10xf32>
    %cst_26 = arith.constant 1.000000e-16 : f32
    %98 = vector.broadcast %cst_26 : f32 to vector<5x10xf32>
    %99 = arith.maximumf %97, %98 : vector<5x10xf32>
    %100 = math.rsqrt %99 : vector<5x10xf32>
    %101 = arith.mulf %42, %100 : vector<5x10xf32>
    %cst_27 = arith.constant 14.2857141 : f32
    %102 = vector.broadcast %cst_27 : f32 to vector<5x1xf32>
    %103 = arith.mulf %94, %102 : vector<5x1xf32>
    %104 = math.exp %103 : vector<5x1xf32>
    %cst_28 = arith.constant 14.2857141 : f32
    %105 = vector.broadcast %cst_28 : f32 to vector<5x10xf32>
    %106 = arith.mulf %101, %105 : vector<5x10xf32>
    %107 = math.exp %106 : vector<5x10xf32>
    %108 = vector.broadcast %83 : vector<1x10xf32> to vector<5x10xf32>
    %109 = arith.mulf %107, %108 : vector<5x10xf32>
    %cst_29 = arith.constant dense<0.000000e+00> : vector<5xf32>
    %110 = vector.multi_reduction <add>, %109, %cst_29 [1] : vector<5x10xf32> to vector<5xf32>
    %111 = vector.shape_cast %110 : vector<5xf32> to vector<5x1xf32>
    %112 = arith.addf %104, %111 : vector<5x1xf32>
    %113 = math.log %112 : vector<5x1xf32>
    %cst_30 = arith.constant 14.2857141 : f32
    %114 = vector.broadcast %cst_30 : f32 to vector<5x1xf32>
    %115 = arith.mulf %94, %114 : vector<5x1xf32>
    %116 = arith.subf %113, %115 : vector<5x1xf32>
    %117 = vector.shape_cast %116 : vector<5x1xf32> to vector<1x5x1xf32>
    %cst_31 = arith.constant dense<0.000000e+00> : vector<1xf32>
    %118 = vector.multi_reduction <add>, %117, %cst_31 [1, 2] : vector<1x5x1xf32> to vector<1xf32>
    %119 = vector.shape_cast %118 : vector<1xf32> to vector<1x1x1xf32>
    %120 = vector.extract %119[0, 0, 0] : f32 from vector<1x1x1xf32>
    %121 = vector.broadcast %120 : f32 to vector<1x1xf32>
    %cst_32 = arith.constant 2.000000e-01 : f32
    %122 = vector.broadcast %cst_32 : f32 to vector<1x1xf32>
    %123 = arith.mulf %121, %122 : vector<1x1xf32>
    %124 = arith.addf %79, %123 : vector<1x1xf32>
    %125 = vector.extract_strided_slice %31 {offsets = [0, 0], sizes = [8, 32], strides = [1, 1]} : vector<10x32xf32> to vector<8x32xf32>
    %c24 = arith.constant 24 : index
    %c0_33 = arith.constant 0 : index
    %126 = vector.load %arg2[%c24, %c0_33] : memref<592x128xf32, #tpu.memory_space<vmem>>, vector<32x64xf32>
    %cst_34 = arith.constant dense<0.000000e+00> : vector<8x64xf32>
    %127 = tpu.matmul %125, %126, %cst_34 {dimension_numbers = #tpu.dot_dimension_numbers<[1], [0], [0], [1], [0, 0, 1, 1], [], []>} : vector<8x32xf32>, vector<32x64xf32>, vector<8x64xf32> -> vector<8x64xf32>
    %c56 = arith.constant 56 : index
    %c0_35 = arith.constant 0 : index
    %128 = vector.load %arg2[%c56, %c0_35] : memref<592x128xf32, #tpu.memory_space<vmem>>, vector<1x64xf32>
    %129 = vector.broadcast %128 : vector<1x64xf32> to vector<8x64xf32>
    %130 = arith.addf %127, %129 : vector<8x64xf32>
    %131 = math.tanh %130 : vector<8x64xf32>
    %c64 = arith.constant 64 : index
    %c0_36 = arith.constant 0 : index
    %132 = vector.load %arg2[%c64, %c0_36] : memref<592x128xf32, #tpu.memory_space<vmem>>, vector<64x128xf32>
    %cst_37 = arith.constant dense<0.000000e+00> : vector<8x128xf32>
    %133 = tpu.matmul %131, %132, %cst_37 {dimension_numbers = #tpu.dot_dimension_numbers<[1], [0], [0], [1], [0, 0, 1, 1], [], []>} : vector<8x64xf32>, vector<64x128xf32>, vector<8x128xf32> -> vector<8x128xf32>
    %c128 = arith.constant 128 : index
    %c0_38 = arith.constant 0 : index
    %134 = vector.load %arg2[%c128, %c0_38] : memref<592x128xf32, #tpu.memory_space<vmem>>, vector<1x128xf32>
    %135 = vector.broadcast %134 : vector<1x128xf32> to vector<8x128xf32>
    %136 = arith.addf %133, %135 : vector<8x128xf32>
    %137 = math.tanh %136 : vector<8x128xf32>
    %c136 = arith.constant 136 : index
    %c0_39 = arith.constant 0 : index
    %138 = vector.load %arg2[%c136, %c0_39] : memref<592x128xf32, #tpu.memory_space<vmem>>, vector<128x64xf32>
    %cst_40 = arith.constant dense<0.000000e+00> : vector<8x64xf32>
    %139 = tpu.matmul %137, %138, %cst_40 {dimension_numbers = #tpu.dot_dimension_numbers<[1], [0], [0], [1], [0, 0, 1, 1], [], []>} : vector<8x128xf32>, vector<128x64xf32>, vector<8x64xf32> -> vector<8x64xf32>
    %c264 = arith.constant 264 : index
    %c0_41 = arith.constant 0 : index
    %140 = vector.load %arg2[%c264, %c0_41] : memref<592x128xf32, #tpu.memory_space<vmem>>, vector<1x64xf32>
    %141 = vector.broadcast %140 : vector<1x64xf32> to vector<8x64xf32>
    %142 = arith.addf %139, %141 : vector<8x64xf32>
    %143 = tpu.iota {dimensions = array<i32: 0>} : vector<8x64xi32>
    %c5_i32_42 = arith.constant 5 : i32
    %144 = vector.broadcast %c5_i32_42 : i32 to vector<8x64xi32>
    %145 = arith.cmpi slt, %143, %144 : vector<8x64xi32>
    %cst_43 = arith.constant 0.000000e+00 : f32
    %146 = vector.broadcast %cst_43 : f32 to vector<8x64xf32>
    %147 = arith.select %145, %142, %146 : vector<8x64xi1>, vector<8x64xf32>
    %c16 = arith.constant 16 : index
    %c0_44 = arith.constant 0 : index
    %148 = vector.load %arg2[%c16, %c0_44] : memref<592x128xf32, #tpu.memory_space<vmem>>, vector<5x32xf32>
    %149 = tpu.iota {dimensions = array<i32: 0>} : vector<25x5xi32>
    %150 = tpu.iota {dimensions = array<i32: 1>} : vector<25x5xi32>
    %c5_i32_45 = arith.constant 5 : i32
    %151 = vector.broadcast %c5_i32_45 : i32 to vector<25x5xi32>
    %152 = arith.muli %150, %151 : vector<25x5xi32>
    %153 = arith.cmpi sge, %149, %152 : vector<25x5xi32>
    %c1_i32_46 = arith.constant 1 : i32
    %154 = vector.broadcast %c1_i32_46 : i32 to vector<25x5xi32>
    %155 = arith.addi %150, %154 : vector<25x5xi32>
    %c5_i32_47 = arith.constant 5 : i32
    %156 = vector.broadcast %c5_i32_47 : i32 to vector<25x5xi32>
    %157 = arith.muli %155, %156 : vector<25x5xi32>
    %158 = arith.cmpi slt, %149, %157 : vector<25x5xi32>
    %159 = arith.andi %153, %158 : vector<25x5xi1>
    %160 = arith.extui %159 : vector<25x5xi1> to vector<25x5xi32>
    %161 = arith.sitofp %160 : vector<25x5xi32> to vector<25x5xf32>
    %c1_i32_48 = arith.constant 1 : i32
    %162 = vector.broadcast %c1_i32_48 : i32 to vector<25x5xi32>
    %163 = arith.addi %150, %162 : vector<25x5xi32>
    %c5_i32_49 = arith.constant 5 : i32
    %164 = vector.broadcast %c5_i32_49 : i32 to vector<25x5xi32>
    %165 = arith.muli %163, %164 : vector<25x5xi32>
    %166 = arith.cmpi sge, %149, %165 : vector<25x5xi32>
    %167 = arith.extui %166 : vector<25x5xi1> to vector<25x5xi32>
    %cst_50 = arith.constant dense<0> : vector<25xi32>
    %168 = vector.multi_reduction <add>, %167, %cst_50 [1] : vector<25x5xi32> to vector<25xi32>
    %169 = vector.shape_cast %168 : vector<25xi32> to vector<25x1xi32>
    %170 = tpu.iota {dimensions = array<i32: 0>} : vector<25x5xi32>
    %171 = tpu.iota {dimensions = array<i32: 1>} : vector<25x5xi32>
    %c5_i32_51 = arith.constant 5 : i32
    %172 = vector.broadcast %c5_i32_51 : i32 to vector<25x1xi32>
    %173 = arith.muli %169, %172 : vector<25x1xi32>
    %174 = vector.broadcast %173 : vector<25x1xi32> to vector<25x5xi32>
    %175 = arith.subi %170, %174 : vector<25x5xi32>
    %176 = arith.cmpi eq, %175, %171 : vector<25x5xi32>
    %177 = arith.extui %176 : vector<25x5xi1> to vector<25x5xi32>
    %178 = arith.sitofp %177 : vector<25x5xi32> to vector<25x5xf32>
    %cst_52 = arith.constant dense<0.000000e+00> : vector<25x32xf32>
    %179 = tpu.matmul %161, %33, %cst_52 {dimension_numbers = #tpu.dot_dimension_numbers<[1], [0], [0], [1], [0, 0, 1, 1], [], []>} : vector<25x5xf32>, vector<5x32xf32>, vector<25x32xf32> -> vector<25x32xf32>
    %cst_53 = arith.constant dense<0.000000e+00> : vector<25x32xf32>
    %180 = tpu.matmul %178, %148, %cst_53 {dimension_numbers = #tpu.dot_dimension_numbers<[1], [0], [0], [1], [0, 0, 1, 1], [], []>} : vector<25x5xf32>, vector<5x32xf32>, vector<25x32xf32> -> vector<25x32xf32>
    %181 = arith.addf %179, %180 : vector<25x32xf32>
    %c272 = arith.constant 272 : index
    %c0_54 = arith.constant 0 : index
    %182 = vector.load %arg2[%c272, %c0_54] : memref<592x128xf32, #tpu.memory_space<vmem>>, vector<32x64xf32>
    %cst_55 = arith.constant dense<0.000000e+00> : vector<25x64xf32>
    %183 = tpu.matmul %181, %182, %cst_55 {dimension_numbers = #tpu.dot_dimension_numbers<[1], [0], [0], [1], [0, 0, 1, 1], [], []>} : vector<25x32xf32>, vector<32x64xf32>, vector<25x64xf32> -> vector<25x64xf32>
    %c304 = arith.constant 304 : index
    %c0_56 = arith.constant 0 : index
    %184 = vector.load %arg2[%c304, %c0_56] : memref<592x128xf32, #tpu.memory_space<vmem>>, vector<1x64xf32>
    %185 = vector.broadcast %184 : vector<1x64xf32> to vector<25x64xf32>
    %186 = arith.addf %183, %185 : vector<25x64xf32>
    %cst_57 = arith.constant 0.000000e+00 : f32
    %187 = vector.broadcast %cst_57 : f32 to vector<25x64xf32>
    %188 = arith.maximumf %186, %187 : vector<25x64xf32>
    %c312 = arith.constant 312 : index
    %c0_58 = arith.constant 0 : index
    %189 = vector.load %arg2[%c312, %c0_58] : memref<592x128xf32, #tpu.memory_space<vmem>>, vector<64x128xf32>
    %cst_59 = arith.constant dense<0.000000e+00> : vector<25x128xf32>
    %190 = tpu.matmul %188, %189, %cst_59 {dimension_numbers = #tpu.dot_dimension_numbers<[1], [0], [0], [1], [0, 0, 1, 1], [], []>} : vector<25x64xf32>, vector<64x128xf32>, vector<25x128xf32> -> vector<25x128xf32>
    %c376 = arith.constant 376 : index
    %c0_60 = arith.constant 0 : index
    %191 = vector.load %arg2[%c376, %c0_60] : memref<592x128xf32, #tpu.memory_space<vmem>>, vector<1x128xf32>
    %192 = vector.broadcast %191 : vector<1x128xf32> to vector<25x128xf32>
    %193 = arith.addf %190, %192 : vector<25x128xf32>
    %cst_61 = arith.constant 0.000000e+00 : f32
    %194 = vector.broadcast %cst_61 : f32 to vector<25x128xf32>
    %195 = arith.maximumf %193, %194 : vector<25x128xf32>
    %c384 = arith.constant 384 : index
    %c0_62 = arith.constant 0 : index
    %196 = vector.load %arg2[%c384, %c0_62] : memref<592x128xf32, #tpu.memory_space<vmem>>, vector<128x64xf32>
    %cst_63 = arith.constant dense<0.000000e+00> : vector<25x64xf32>
    %197 = tpu.matmul %195, %196, %cst_63 {dimension_numbers = #tpu.dot_dimension_numbers<[1], [0], [0], [1], [0, 0, 1, 1], [], []>} : vector<25x128xf32>, vector<128x64xf32>, vector<25x64xf32> -> vector<25x64xf32>
    %c512 = arith.constant 512 : index
    %c0_64 = arith.constant 0 : index
    %198 = vector.load %arg2[%c512, %c0_64] : memref<592x128xf32, #tpu.memory_space<vmem>>, vector<1x64xf32>
    %199 = vector.broadcast %198 : vector<1x64xf32> to vector<25x64xf32>
    %200 = arith.addf %197, %199 : vector<25x64xf32>
    %cst_65 = arith.constant 0.000000e+00 : f32
    %201 = vector.broadcast %cst_65 : f32 to vector<25x64xf32>
    %202 = arith.maximumf %200, %201 : vector<25x64xf32>
    %c520 = arith.constant 520 : index
    %c0_66 = arith.constant 0 : index
    %203 = vector.load %arg2[%c520, %c0_66] : memref<592x128xf32, #tpu.memory_space<vmem>>, vector<64x10xf32>
    %cst_67 = arith.constant dense<0.000000e+00> : vector<25x10xf32>
    %204 = tpu.matmul %202, %203, %cst_67 {dimension_numbers = #tpu.dot_dimension_numbers<[1], [0], [0], [1], [0, 0, 1, 1], [], []>} : vector<25x64xf32>, vector<64x10xf32>, vector<25x10xf32> -> vector<25x10xf32>
    %c584 = arith.constant 584 : index
    %c0_68 = arith.constant 0 : index
    %205 = vector.load %arg2[%c584, %c0_68] : memref<592x128xf32, #tpu.memory_space<vmem>>, vector<1x10xf32>
    %206 = vector.broadcast %205 : vector<1x10xf32> to vector<25x10xf32>
    %207 = arith.addf %204, %206 : vector<25x10xf32>
    %cst_69 = arith.constant dense<0.000000e+00> : vector<25x10xf32>
    %208 = tpu.matmul %161, %69, %cst_69 {dimension_numbers = #tpu.dot_dimension_numbers<[1], [0], [0], [1], [0, 0, 1, 1], [], []>} : vector<25x5xf32>, vector<5x10xf32>, vector<25x10xf32> -> vector<25x10xf32>
    %cst_70 = arith.constant dense<0xFF800000> : vector<25xf32>
    %209 = vector.multi_reduction <maximumf>, %207, %cst_70 [1] : vector<25x10xf32> to vector<25xf32>
    %210 = vector.shape_cast %209 : vector<25xf32> to vector<25x1xf32>
    %211 = vector.broadcast %210 : vector<25x1xf32> to vector<25x10xf32>
    %212 = arith.subf %207, %211 : vector<25x10xf32>
    %213 = math.exp %212 : vector<25x10xf32>
    %cst_71 = arith.constant dense<0.000000e+00> : vector<25xf32>
    %214 = vector.multi_reduction <add>, %213, %cst_71 [1] : vector<25x10xf32> to vector<25xf32>
    %215 = vector.shape_cast %214 : vector<25xf32> to vector<25x1xf32>
    %216 = math.log %215 : vector<25x1xf32>
    %217 = arith.addf %210, %216 : vector<25x1xf32>
    %218 = arith.mulf %207, %208 : vector<25x10xf32>
    %cst_72 = arith.constant dense<0.000000e+00> : vector<25xf32>
    %219 = vector.multi_reduction <add>, %218, %cst_72 [1] : vector<25x10xf32> to vector<25xf32>
    %220 = vector.shape_cast %219 : vector<25xf32> to vector<25x1xf32>
    %221 = arith.subf %217, %220 : vector<25x1xf32>
    %cst_73 = arith.constant 0.000000e+00 : f32
    %222 = vector.broadcast %cst_73 : f32 to vector<25x1xf32>
    %223 = arith.subf %222, %221 : vector<25x1xf32>
    %224 = math.exp %223 : vector<25x1xf32>
    %cst_74 = arith.constant 1.000000e+00 : f32
    %225 = vector.broadcast %cst_74 : f32 to vector<25x1xf32>
    %226 = arith.subf %225, %224 : vector<25x1xf32>
    %227 = arith.mulf %226, %226 : vector<25x1xf32>
    %228 = arith.mulf %227, %221 : vector<25x1xf32>
    %229 = vector.shape_cast %228 : vector<25x1xf32> to vector<1x25x1xf32>
    %cst_75 = arith.constant dense<0.000000e+00> : vector<1xf32>
    %230 = vector.multi_reduction <add>, %229, %cst_75 [1, 2] : vector<1x25x1xf32> to vector<1xf32>
    %231 = vector.shape_cast %230 : vector<1xf32> to vector<1x1x1xf32>
    %232 = vector.extract %231[0, 0, 0] : f32 from vector<1x1x1xf32>
    %233 = vector.broadcast %232 : f32 to vector<1x1xf32>
    %cst_76 = arith.constant 4.000000e-02 : f32
    %234 = vector.broadcast %cst_76 : f32 to vector<1x1xf32>
    %235 = arith.mulf %233, %234 : vector<1x1xf32>
    %236 = tpu.iota {dimensions = array<i32: 0>} : vector<8x64xi32>
    %237 = tpu.iota {dimensions = array<i32: 1>} : vector<8x64xi32>
    %c0_i32_77 = arith.constant 0 : i32
    %238 = vector.broadcast %c0_i32_77 : i32 to vector<8x64xi32>
    %239 = arith.cmpi eq, %236, %238 : vector<8x64xi32>
    %c0_i32_78 = arith.constant 0 : i32
    %240 = vector.broadcast %c0_i32_78 : i32 to vector<8x64xi32>
    %241 = arith.cmpi eq, %237, %240 : vector<8x64xi32>
    %242 = arith.andi %239, %241 : vector<8x64xi1>
    %cst_79 = arith.constant 1.000000e+00 : f32
    %cst_80 = arith.constant 0.000000e+00 : f32
    %243 = vector.broadcast %cst_79 : f32 to vector<8x64xf32>
    %244 = vector.broadcast %cst_80 : f32 to vector<8x64xf32>
    %245 = arith.select %242, %243, %244 : vector<8x64xi1>, vector<8x64xf32>
    %246 = vector.broadcast %124 : vector<1x1xf32> to vector<8x64xf32>
    %247 = arith.mulf %245, %246 : vector<8x64xf32>
    %c0_i32_81 = arith.constant 0 : i32
    %248 = vector.broadcast %c0_i32_81 : i32 to vector<8x64xi32>
    %249 = arith.cmpi eq, %236, %248 : vector<8x64xi32>
    %c1_i32_82 = arith.constant 1 : i32
    %250 = vector.broadcast %c1_i32_82 : i32 to vector<8x64xi32>
    %251 = arith.cmpi eq, %237, %250 : vector<8x64xi32>
    %252 = arith.andi %249, %251 : vector<8x64xi1>
    %cst_83 = arith.constant 1.000000e+00 : f32
    %cst_84 = arith.constant 0.000000e+00 : f32
    %253 = vector.broadcast %cst_83 : f32 to vector<8x64xf32>
    %254 = vector.broadcast %cst_84 : f32 to vector<8x64xf32>
    %255 = arith.select %252, %253, %254 : vector<8x64xi1>, vector<8x64xf32>
    %256 = vector.broadcast %235 : vector<1x1xf32> to vector<8x64xf32>
    %257 = arith.mulf %255, %256 : vector<8x64xf32>
    %258 = arith.addf %247, %257 : vector<8x64xf32>
    %259 = tpu.concatenate %147, %258 in 1 : vector<8x64xf32>, vector<8x64xf32> -> vector<8x128xf32>
    %c0_85 = arith.constant 0 : index
    %c0_86 = arith.constant 0 : index
    %260 = vector.load %arg3[%c0_85, %c0_86] : memref<8x128xf32, #tpu.memory_space<vmem>>, vector<8x128xf32>
    tpu.vector_store %arg3[%c0_85, %c0_86], %259 {strides = array<i32>} : memref<8x128xf32, #tpu.memory_space<vmem>>, vector<8x128xf32>,
    return
  }
}

</mosaic_0001>

<bundles_post_ra>
// kernel: ms_model_forward.1
= control target key start
LH: loop header
LB: loop body
LE: loop exit
PB: predicated region body
PF: predicated region fallthrough
CT: control target
= control target key end

     0   :  { %8 = vsyncpa [#allocation3], 0  ;;  %s2410_s12 = smov [#allocation2]   ;;  %s2762_s0 = inlined_call_operand.vmem [shape: s32[10,8], index: 0, kind: input, shape index: {}]   ;;  %s2763_s1 = inlined_call_operand.vmem [shape: f32[80,32], index: 1, kind: input, shape index: {}]   ;;  %s2764_s2 = inlined_call_operand.hbm [shape: f32[592,128], index: 2, kind: input, shape index: {}]   ;;  %s2765_s3 = inlined_call_operand.vmem [shape: f32[8,128], index: 3, kind: output, shape index: {}]  }
   0x1   :  { %s18_s13 = sshll.u32 %s2410_s12, 4  ;;  %s2386_s16 = scalar_lea.hbm %s2764_s2, 9472  ;;  %s19_s13 = int_to_ptr.vmem [resolvable:$true] %s18_s13 }
   0x2   :  { %p2387_p0 = scmp.ne.s32.totalorder %s2764_s2, %s2386_s16  ;;  %p2390_p1 = scmp.lt.u32.totalorder %s2386_s16, %s2764_s2 }
   0x4   :  { %p2392_p2 = pnand %p2390_p1, %p2387_p0 }
   0x6   :  { %2395 = shalt.err (!%p2392_p2)
}
   0x7   :  { %s2396_s21 = scalar_lea.vmem %s19_s13, 9472  ;;  %p2401_p4 = scmp.lt.s32.totalorder %s19_s13, %s19_s13 }
   0x8   :  { %p2397_p3 = scmp.ne.s32.totalorder %s19_s13, %s2396_s21  ;;  %p2402_p5 = scmp.lt.s32.totalorder %s2396_s21, %s2396_s21 }
   0xa   :  { %p2403_p6 = por %p2402_p5, %p2401_p4 }
   0xc   :  { %p2404_p7 = pnand %p2403_p6, %p2397_p3 }
   0xe   :  { %2407 = shalt.err (!%p2404_p7)
}
   0xf   :  { %s2411_s22 = smov 128   ;;  %s2412_s23 = smov 8  }
  0x10   :  { %24 = dma.hbm_to_vmem [thread:$0]  %s2764_s2, 9472, %s19_s13, [#allocation3], %s2411_s22, %s2411_s22, %s2412_s23  }
  0x11   :  { %2408 = dma.done.wait [#allocation3], 9472  }
  0x12   :  { %2409 = vsyncadd [#allocation3], 4294957824  ;;  %v30_v0 = vlaneseq  ;;  %v28_v2 = vld [vmem:[%s2762_s0] sm:$0xff]  ;;  %vm2413_vm1 = vmmov 1   ;;  %v29_v4 = vld [vmem:[%s2762_s0 + $0x8] sm:$0x3] }
  0x13   :  { %vm35_vm3 = vcmp.ne.s32.totalorder %v28_v2, 1  ;;  %vm41_vm4 = vcmp.ne.s32.totalorder %v28_v2, 4294967196  ;;  %vm42_vm5 = vcmp.ne.s32.totalorder %v29_v4, 4294967196  ;;  %vm67_vm6 = vcmask 58368   ;;  %v97_v13 = vld [vmem:[%s2763_s1] sm:$0xff]  ;;  %v98_v14 = vld [vmem:[%s2763_s1 + $0x8] sm:$0xff] }
  0x14   :  { %v2452_v1 = vshrl.u32 %v30_v0, 7  ;;  %v2461_v3 = vand.u32 127, %v30_v0  ;;  %vm51_vm9 = vcmask 64512   ;;  %v99_v15 = vld [vmem:[%s2763_s1 + $0x10] sm:$0xff]  ;;  %v2182_v16 = vpack.c.bf16 %v98_v14, %v97_v13  ;;  %v100_v17 = vld [vmem:[%s2763_s1 + $0x18] sm:$0xff]  ;;  %v101_v27 = vld [vmem:[%s2763_s1 + $0x20] sm:$0xff] }
  0x15   :  { %v2186_v18 = vpack.c.bf16 %v100_v17, %v99_v15  ;;  %v102_v28 = vld [vmem:[%s2763_s1 + $0x28] sm:$0xff]  ;;  %v103_v30 = vld [vmem:[%s2763_s1 + $0x30] sm:$0xff]  ;;  %v104_v31 = vld [vmem:[%s2763_s1 + $0x38] sm:$0xff]  ;;  %v2414_v36 = vmov 0.0|0.0   ;;  %vm107_vm14 = vcmask 654336   ;;  %v2415_v55 = vmov 0.0  }
  0x16   :  { %vm2766_vm0 = vcmp.lt.s32.totalorder %v2452_v1, 5  ;;  %v50_v5 = vsel %vm42_vm5, %v2461_v3, 8  ;;  %2183 = vmatprep.subr.bf16.mxu0 %v2182_v16  ;;  %v2190_v29 = vpack.c.bf16 %v102_v28, %v101_v27  ;;  %v2194_v32 = vpack.c.bf16 %v104_v31, %v103_v30  ;;  %v105_v33 = vld [vmem:[%s2763_s1 + $0x40] sm:$0xff]  ;;  %v106_v34 = vld [vmem:[%s2763_s1 + $0x48] sm:$0xff]  ;;  %2202 = vmatprep.subr.bf16.mxu1 %v2414_v36  ;;  %v540_v52 = vld [vmem:[#allocation2 + $0x18] sm:$0xff]  ;;  %s2419_s23 = smov 64  }
  0x17   :  { %vm39_vm2 = vmxor %vm2766_vm0, %vm2413_vm1  ;;  %v68_v6 = vsel %vm67_vm6, %v50_v5, 2147483647  ;;  %2185 = vmatpush3.bf16.msra.mxu0 %v2182_v16  ;;  %v2198_v35 = vpack.c.bf16 %v106_v34, %v105_v33  ;;  %v2503_v43 = vadd.s32 8, %v2452_v1  ;;  %v87_v44 = vmul.u32 8, %v2452_v1  ;;  %v541_v53 = vld [vmem:[#allocation2 + $0x20] sm:$0xff]  ;;  %v542_v59 = vld [vmem:[#allocation2 + $0x28] sm:$0xff] }
  0x18   :  { %vm37_vm7 = vmand %vm2766_vm0, %vm35_vm3  ;;  %v70_v10 = vshra.s32 %v68_v6, 16  ;;  %2187 = vmatprep.subr.bf16.mxu0 %v2186_v18  ;;  %v69_v21 = vand.u32 65535, %v68_v6  ;;  %v2215_v58 = vpack.c.bf16 %v541_v53, %v540_v52  ;;  %v543_v60 = vld [vmem:[#allocation2 + $0x30] sm:$0xff]  ;;  %v195_v63 = vsub.s32 0, %v2452_v1  ;;  %v189_v5 = vld [vmem:[#allocation2] sm:$0xff] }
  0x19   :  { %vm43_vm8 = vmand %vm39_vm2, %vm41_vm4  ;;  %v88_v49 = vmul.u32 8, %v2503_v43  ;;  %v2218_v62 = vpack.c.bf16 %v543_v60, %v542_v59  ;;  %vm2416_vm4 = vmmov 0   ;;  %vm199_vm5 = vcmask 261120  }
  0x1a   :  { %vm45_vm10 = vmor %vm37_vm7, %vm43_vm8  ;;  %v72_v12 = vcvt.s32.f32 %v70_v10  ;;  %v71_v24 = vcvt.s32.f32 %v69_v21  ;;  %1980 = vmatprep.mubr.msk.f32.mxu1 %vm2416_vm4, %v2415_v55  ;;  %vm280_vm6 = vcmask 258048   ;;  %vm2767_vm7 = vcmp.eq.s32.totalorder %v2452_v1, 0 }
  0x1b   :  { %v49_v7 = vsel %vm45_vm10, %v2461_v3, 8  ;;  %2189 = vmatpush3.bf16.msra.mxu0 %v2186_v18  ;;  %vm1010_vm8 = vcmask 1042432   ;;  %vm401_vm10 = vcmask 1041408   ;;  %v2417_v17 = vmov 1.0  }
  0x1c   :  { %v52_v8 = vsel %vm51_vm9, %v49_v7, 2147483647  ;;  %2191 = vmatprep.subr.bf16.mxu0 %v2190_v29  ;;  %v190_v7 = vld [vmem:[#allocation2 + $0x8] sm:$0x3]  ;;  %vm2204_vm9 = vmpackc.low %vm199_vm5, %vm199_vm5  ;;  %v2573_v60 = vadd.s32 24, %v2452_v1 }
  0x1d   :  { %v54_v9 = vshra.s32 %v52_v8, 16  ;;  %v53_v19 = vand.u32 65535, %v52_v8  ;;  %v285_v15 = vmul.f32 %v190_v7, %v190_v7 }
  0x1f   :  { %v56_v11 = vcvt.s32.f32 %v54_v9  ;;  %v55_v20 = vcvt.s32.f32 %v53_v19  ;;  %2193 = vmatpush3.bf16.msra.mxu0 %v2190_v29 }
  0x20   :  { %2195 = vmatprep.subr.bf16.mxu0 %v2194_v32 }
  0x21   :  { %57 = vmin.xlane.f32.xlu0 %v56_v11 }
  0x23   :  { %2197 = vmatpush3.bf16.msra.mxu0 %v2194_v32 }
  0x24   :  { %2199 = vmatprep.subr.bf16.mxu0 %v2198_v35 }
  0x25   :  { %73 = vmin.xlane.f32.xlu0 %v72_v12 }
  0x27   :  { %2201 = vmatpush3.bf16.msra.mxu0 %v2198_v35 }
  0x28   :  { %2214 = vmatprep.subr.bf16.mxu0 %v2414_v36 }
  0xae   :  { %v58_v22 = vpop.xlane.xlu0 %57 }
  0xaf   :  { %vm59_vm11 = vcmp.eq.f32.partialorder %v56_v11, %v58_v22  ;;  %v64_v37 = vcvt.f32.s32 %v58_v22 }
  0xb0   :  { %v60_v23 = vsel %vm59_vm11, %v55_v20, inf  ;;  %vm2212_vm11 = vmpackc.low %vm401_vm10, %vm2413_vm1  ;;  %vm2768_vm1 = vcmask 77824   ;;  %vm397_vm10 = vcmask 80896  }
  0xb1   :  { %61 = vmin.xlane.f32.xlu1 %v60_v23  ;;  %v65_v39 = vshll.u32 %v64_v37, 16 }
  0xb2   :  { %v74_v25 = vpop.xlane.xlu0 %73 }
  0xb3   :  { %vm75_vm12 = vcmp.eq.f32.partialorder %v72_v12, %v74_v25  ;;  %v80_v40 = vcvt.f32.s32 %v74_v25 }
  0xb4   :  { %v76_v26 = vsel %vm75_vm12, %v71_v24, inf }
  0xb5   :  { %77 = vmin.xlane.f32.xlu1 %v76_v26  ;;  %v81_v46 = vshll.u32 %v80_v40, 16 }
 0x13e   :  { %v62_v38 = vpop.xlane.xlu1 %61 }
 0x13f   :  { %v63_v41 = vcvt.f32.s32 %v62_v38 }
 0x141   :  { %v66_v42 = vadd.s32 %v65_v39, %v63_v41  ;;  %v808_v41 = vadd.s32 1, %v2461_v3 }
 0x142   :  { %v78_v45 = vpop.xlane.xlu1 %77 }
 0x143   :  { %vm83_vm13 = vcmp.eq.s32.totalorder %v66_v42, 8  ;;  %v79_v47 = vcvt.f32.s32 %v78_v45 }
 0x144   :  { %v85_v48 = vsel %vm83_vm13, 0, %v66_v42  ;;  %v2559_v42 = vmul.u32 5, %v808_v41 }
 0x145   :  { %v82_v50 = vadd.s32 %v81_v46, %v79_v47  ;;  %v89_v51 = vadd.s32 %v87_v44, %v85_v48  ;;  %v2418_v44 = vmov 0  }
 0x146   :  { %vm826_vm13 = vcmp.ge.s32.totalorder %v2452_v1, %v2559_v42 }
 0x147   :  { %vm84_vm15 = vcmp.eq.s32.totalorder %v82_v50, 8  ;;  %vm91_vm2 = vcmp.eq.s32.totalorder %v2461_v3, %v89_v51  ;;  %v830_v45 = vsel %vm826_vm13, 1, %v2418_v44  ;;  %vm633_vm13 = vcmask 523264  }
 0x148   :  { %v86_v54 = vsel %vm84_vm15, 0, %v82_v50  ;;  %v1777_v56 = vsel %vm91_vm2, 1.0, %v2415_v55  ;;  %vm827_vm2 = vcmp.ge.s32.totalorder %v2503_v43, %v2559_v42 }
 0x149   :  { %v90_v57 = vadd.s32 %v88_v49, %v86_v54  ;;  %1973 = vmatprep.mubr.msk.f32.mxu0 %vm107_vm14, %v1777_v56  ;;  %v2565_v49 = vadd.s32 16, %v2452_v1  ;;  %v831_v59 = vsel %vm827_vm2, 1, %v2418_v44 }
 0x14b   :  { %vm92_vm3 = vcmp.eq.s32.totalorder %v2461_v3, %v90_v57  ;;  %vm828_vm15 = vcmp.ge.s32.totalorder %v2565_v49, %v2559_v42 }
 0x14c   :  { %v1778_v61 = vsel %vm92_vm3, 1.0, %v2415_v55  ;;  %v832_v52 = vsel %vm828_vm15, 1, %v2418_v44  ;;  %vm829_vm3 = vcmp.ge.s32.totalorder %v2573_v60, %v2559_v42 }
 0x14d   :  { %1974 = vmatmul.mubr.msk.f32.vlgmr.msra.gmra.mrb[0].mxu0 %vm107_vm14, %v1778_v61  ;;  %vm834_vm14 = vcmask 39936  }
 0x14e   :  { %2216 = vmatpush3.bf16.msra.mxu0 %v2215_v58  ;;  %2005 = vmatprep.mubr.msk.f32.mxu0 %vm2416_vm4, %v2415_v55  ;;  %v835_v46 = vsel %vm834_vm14, %v830_v45, 0  ;;  %v861_v53 = vsel %vm834_vm14, %v832_v52, 0  ;;  %v623_v45 = vld [vmem:[#allocation2 + $0x58] sm:$0xff] }
 0x14f   :  { %2217 = vmatprep.subr.bf16.mxu0 %v2414_v36  ;;  %v837_v47 = vshrl.u32 %v835_v46, 16  ;;  %v836_v50 = vand.u32 65535, %v835_v46  ;;  %v863_v54 = vshrl.u32 %v861_v53, 16  ;;  %v862_v57 = vand.u32 65535, %v861_v53 }
 0x151   :  { %v839_v48 = vcvt.s32.f32 %v837_v47  ;;  %v838_v51 = vcvt.s32.f32 %v836_v50  ;;  %v865_v56 = vcvt.s32.f32 %v863_v54  ;;  %v864_v58 = vcvt.s32.f32 %v862_v57  ;;  %v624_v57 = vld [vmem:[#allocation2 + $0x60] sm:$0xff] }
 0x152   :  { %2219 = vmatpush3.bf16.msra.mxu0 %v2218_v62  ;;  %v848_v62 = vsel %vm834_vm14, %v831_v59, 0 }
 0x153   :  { %2232 = vmatprep.subr.bf16.mxu0 %v2414_v36 }
 0x220   :  { %v1975_v0 = vpop.f32.mrb[0].mxu0 }
 0x221   :  { %v1012_v2 = vrot.slane %v1975_v0, 5  ;;  %v2518_v4 = vpop.f32.mrb[1].mxu0 }
 0x222   :  { %2006 = vmatmul.mubr.msk.f32.vlgmr.msra.gmra.mrb[2].mxu0 %vm199_vm5, %v2518_v4  ;;  %v279_v6 = vmul.f32 %v2518_v4, %v2518_v4  ;;  %v196_v8 = vrot.slane %v2518_v4, %v195_v63  ;;  %v1011_v9 = vrot.slane %v2518_v4, 5 }
 0x223   :  { %2059 = vmatprep.mubr.msk.f32.mxu0 %vm2416_vm4, %v2415_v55 }
 0x224   :  { %v281_v10 = vsel %vm280_vm6, %v279_v6, 0.0  ;;  %v197_v11 = vsel %vm2767_vm7, %v196_v8, %v189_v5  ;;  %v2534_v12 = vsel %vm1010_vm8, %v1011_v9, %v1012_v2  ;;  %v833_v5 = vsel %vm829_vm3, 1, %v2418_v44  ;;  %v622_v44 = vld [vmem:[#allocation2 + $0x50] sm:$0xff] }
 0x225   :  { %282 = vadd.xlane.f32.xlu0 %v281_v10  ;;  %v2203_v13 = vpack.c.bf16 %v190_v7, %v197_v11  ;;  %v284_v14 = vmul.f32 %v197_v11, %v197_v11  ;;  %v849_v8 = vand.u32 65535, %v848_v62  ;;  %v2224_v54 = vpack.c.bf16 %v623_v45, %v622_v44  ;;  %v719_v44 = vld [vmem:[#allocation2 + $0xe0] sm:$0xff] }
 0x227   :  { %2205 = vmatpush3.bf16.xpose.msk.msra.mxu1 %vm2204_vm9, %v2203_v13  ;;  %v2207_v16 = vpack.c.bf16 %v285_v15, %v284_v14  ;;  %v851_v10 = vcvt.s32.f32 %v849_v8 }
 0x228   :  { %2206 = vmatprep.subr.bf16.mxu1 %v2414_v36 }
 0x22e   :  { %1981 = vmatmul.mubr.msk.f32.vlgmr.msra.gmra.mrb[0].mxu1 %vm199_vm5, %v2518_v4 }
 0x22f   :  { %2209 = vmatpush3.bf16.xpose.msk.msra.mxu1 %vm2204_vm9, %v2207_v16  ;;  %1987 = vmatprep.mubr.msk.f32.mxu1 %vm2416_vm4, %v2415_v55  ;;  %vm874_vm9 = vcmask 32768   ;;  %v708_v16 = vld [vmem:[#allocation2 + $0x88] sm:$0xff] }
 0x230   :  { %2210 = vmatprep.subr.bf16.mxu1 %v2414_v36  ;;  %v875_v9 = vsel %vm874_vm9, %v833_v5, 0  ;;  %v627_v5 = vld [vmem:[#allocation2 + $0x78] sm:$0xff] }
 0x231   :  { %v877_v11 = vshrl.u32 %v875_v9, 16  ;;  %v876_v14 = vand.u32 65535, %v875_v9 }
 0x233   :  { %v878_v15 = vcvt.s32.f32 %v876_v14 }
 0x236   :  { %1988 = vmatmul.mubr.msk.f32.vlgmr.msra.gmra.mrb[2].mxu1 %vm199_vm5, %v2417_v17  ;;  %v709_v17 = vld [vmem:[#allocation2 + $0x90] sm:$0xff] }
 0x237   :  { %2213 = vmatpush3.bf16.msk.msra.mxu1 %vm2212_vm11, %v2203_v13  ;;  %1994 = vmatprep.mubr.msk.f32.mxu1 %vm2416_vm4, %v2415_v55  ;;  %v879_v13 = vcvt.s32.f32 %v877_v11 }
 0x238   :  { %2220 = vmatprep.subr.bf16.mxu1 %v2414_v36 }
 0x2b2   :  { %v2549_v25 = vpop.xlane.xlu0 %282 }
 0x2f5   :  { %v2547_v18 = vpop.f32.mrb[2].mxu0 }
 0x2f6   :  { %v2007_v19 = vpop.f32.mrb[3].mxu0 }
 0x2f7   :  { %v2233_v19 = vpack.c.bf16 %v709_v17, %v708_v16 }
 0x2f9   :  { %2234 = vmatpush3.bf16.msra.mxu0 %v2233_v19  ;;  %v803_v19 = vmul.u32 5, %v2461_v3 }
 0x2fa   :  { %2235 = vmatprep.subr.bf16.mxu0 %v2414_v36 }
 0x2fb   :  { %vm804_vm3 = vcmp.ge.s32.totalorder %v2452_v1, %v803_v19  ;;  %vm806_vm7 = vcmp.ge.s32.totalorder %v2565_v49, %v803_v19 }
 0x301   :  { %v275_v20 = vpop.f32.mrb[0].mxu1 }
 0x302   :  { %v1982_v21 = vpop.f32.mrb[1].mxu1  ;;  %v370_v26 = vmul.f32 2.0, %v275_v20 }
 0x309   :  { %v361_v22 = vpop.f32.mrb[2].mxu1 }
 0x30a   :  { %v368_v23 = vrot.slane %v361_v22, %v195_v63  ;;  %v1989_v24 = vpop.f32.mrb[3].mxu1  ;;  %v850_v63 = vshrl.u32 %v848_v62, 16 }
 0x30c   :  { %v369_v27 = vadd.f32 %v368_v23, %v2549_v25  ;;  %v508_v28 = vmul.f32 %v368_v23, %v2549_v25  ;;  %v852_v7 = vcvt.s32.f32 %v850_v63 }
 0x30e   :  { %v509_v29 = vmax.f32 %v508_v28, 1e-16  ;;  %v371_v30 = vsub.f32 %v369_v27, %v370_v26 }
 0x310   :  { %2348 = vrsqrt.f32 %v509_v29  ;;  %v372_v31 = vmax.f32 %v371_v30, 0.0  ;;  %v620_v29 = vld [vmem:[#allocation2 + $0x40] sm:$0xff]  ;;  %v621_v30 = vld [vmem:[#allocation2 + $0x48] sm:$0xff] }
 0x312   :  { %v374_v32 = vsel %vm2768_vm1, %v372_v31, inf }
 0x313   :  { %375 = vmin.xlane.f32.xlu1 %v374_v32 }
 0x31a   :  { %v2349_v33 = vpop.eup %2348 }
 0x31b   :  { %v2554_v34 = vmul.f32 %v2349_v33, %v275_v20 }
 0x3a0   :  { %v376_v35 = vpop.xlane.xlu1 %375 }
 0x3a1   :  { %vm377_vm12 = vcmp.le.f32.partialorder %v372_v31, %v376_v35 }
 0x3a2   :  { %v378_v37 = vsel %vm377_vm12, %v2461_v3, 10 }
 0x3a3   :  { %v379_v38 = vsel %vm2768_vm1, %v378_v37, 2147483647  ;;  %vm812_vm1 = vcmp.lt.s32.totalorder %v2565_v49, %v2559_v42 }
 0x3a4   :  { %v381_v39 = vshra.s32 %v379_v38, 16  ;;  %v380_v61 = vand.u32 65535, %v379_v38 }
 0x3a6   :  { %v383_v40 = vcvt.s32.f32 %v381_v39  ;;  %v382_v2 = vcvt.s32.f32 %v380_v61  ;;  %v2221_v39 = vpack.c.bf16 %v621_v30, %v620_v29  ;;  %v712_v29 = vld [vmem:[#allocation2 + $0xa8] sm:$0xff] }
 0x3a8   :  { %384 = vmin.xlane.f32.xlu0 %v383_v40 }
 0x3ac   :  { %842 = vadd.xlane.f32.xlu0 %v839_v48 }
 0x3b0   :  { %840 = vadd.xlane.f32.xlu0 %v838_v51 }
 0x3b4   :  { %868 = vadd.xlane.f32.xlu0 %v865_v56 }
 0x3b8   :  { %866 = vadd.xlane.f32.xlu0 %v864_v58  ;;  %v625_v58 = vld [vmem:[#allocation2 + $0x68] sm:$0xff] }
 0x435   :  { %v385_v0 = vpop.xlane.xlu0 %384 }
 0x436   :  { %vm386_vm8 = vcmp.eq.f32.partialorder %v383_v40, %v385_v0  ;;  %v391_v22 = vcvt.f32.s32 %v385_v0  ;;  %v1790_v40 = vld [vmem:[#allocation2 + $0x38] ss:$0 sm:$0xff]  ;;  %v2227_v0 = vpack.c.bf16 %v625_v58, %v624_v57  ;;  %v1115_v57 = vld [vmem:[#allocation2 + $0x120] sm:$0xff]  ;;  %v1116_v58 = vld [vmem:[#allocation2 + $0x128] sm:$0xff] }
 0x437   :  { %v387_v6 = vsel %vm386_vm8, %v382_v2, inf  ;;  %v616_v52 = vadd.f32 %v1790_v40, %v2547_v18  ;;  %v626_v2 = vld [vmem:[#allocation2 + $0x70] sm:$0xff]  ;;  %vm810_vm8 = vcmp.lt.s32.totalorder %v2452_v1, %v2559_v42 }
 0x438   :  { %388 = vmin.xlane.f32.xlu1 %v387_v6  ;;  %v392_v27 = vshll.u32 %v391_v22, 16  ;;  %v2230_v11 = vpack.c.bf16 %v627_v5, %v626_v2  ;;  %vm814_vm9 = vmand %vm804_vm3, %vm810_vm8  ;;  %vm807_vm3 = vcmp.ge.s32.totalorder %v2573_v60, %v803_v19  ;;  %vm813_vm8 = vcmp.lt.s32.totalorder %v2573_v60, %v2559_v42 }
 0x439   :  { %v843_v20 = vpop.xlane.xlu0 %842  ;;  %2350 = vtanh.f32 %v616_v52  ;;  %v1114_v52 = vld [vmem:[#allocation2 + $0x118] sm:$0xff] }
 0x43a   :  { %v845_v24 = vcvt.f32.s32 %v843_v20 }
 0x43c   :  { %855 = vadd.xlane.f32.xlu1 %v852_v7  ;;  %v846_v33 = vshll.u32 %v845_v24, 16 }
 0x43d   :  { %v841_v21 = vpop.xlane.xlu0 %840 }
 0x43e   :  { %v844_v35 = vcvt.f32.s32 %v841_v21 }
 0x440   :  { %853 = vadd.xlane.f32.xlu1 %v851_v10  ;;  %v847_v51 = vadd.s32 %v846_v33, %v844_v35  ;;  %v714_v33 = vld [vmem:[#allocation2 + $0xb8] sm:$0xff]  ;;  %v715_v35 = vld [vmem:[#allocation2 + $0xc0] sm:$0xff] }
 0x441   :  { %v869_v23 = vpop.xlane.xlu0 %868 }
 0x442   :  { %v871_v31 = vcvt.f32.s32 %v869_v23  ;;  %v888_v61 = vmul.u32 5, %v847_v51 }
 0x443   :  { %v2351_v21 = vpop.eup %2350 }
 0x444   :  { %882 = vadd.xlane.f32.xlu1 %v879_v13  ;;  %v872_v47 = vshll.u32 %v871_v31, 16  ;;  %v892_v7 = vsub.s32 %v2452_v1, %v888_v61  ;;  %v713_v31 = vld [vmem:[#allocation2 + $0xb0] sm:$0xff] }
 0x445   :  { %v867_v37 = vpop.xlane.xlu0 %866 }
 0x446   :  { %v870_v48 = vcvt.f32.s32 %v867_v37  ;;  %vm896_vm12 = vcmp.eq.s32.totalorder %v892_v7, %v2461_v3  ;;  %v2242_v37 = vpack.c.bf16 %v715_v35, %v714_v33  ;;  %v1792_v7 = vld [vmem:[#allocation2 + $0x80] ss:$0 sm:$0xff] }
 0x447   :  { %v1799_v22 = vsel %vm896_vm12, 1.0, %v2415_v55  ;;  %vm811_vm12 = vcmp.lt.s32.totalorder %v2503_v43, %v2559_v42  ;;  %v1341_v35 = vld [vmem:[#allocation2 + $0x1a0] sm:$0xff] }
 0x448   :  { %880 = vadd.xlane.f32.xlu1 %v878_v15  ;;  %v873_v59 = vadd.s32 %v872_v47, %v870_v48  ;;  %v800_v15 = vld [vmem:[#allocation2 + $0x10] sm:$0x1f]  ;;  %v720_v47 = vld [vmem:[#allocation2 + $0xe8] sm:$0xff] }
 0x449   :  { %v721_v48 = vld [vmem:[#allocation2 + $0xf0] sm:$0xff] }
 0x44a   :  { %v890_v6 = vmul.u32 5, %v873_v59  ;;  %v2251_v51 = vpack.c.bf16 %v721_v48, %v720_v47  ;;  %v2260_v59 = vpack.c.bf16 %v1116_v58, %v1115_v57  ;;  %v1347_v48 = vld [vmem:[#allocation2 + $0x1d0] sm:$0xff] }
 0x44c   :  { %v894_v14 = vsub.s32 %v2565_v49, %v890_v6 }
 0x44e   :  { %vm898_vm15 = vcmp.eq.s32.totalorder %v894_v14, %v2461_v3 }
 0x44f   :  { %v1801_v24 = vsel %vm898_vm15, 1.0, %v2415_v55 }
 0x4c5   :  { %v389_v26 = vpop.xlane.xlu1 %388 }
 0x4c6   :  { %v390_v28 = vcvt.f32.s32 %v389_v26 }
 0x4c8   :  { %v393_v32 = vadd.s32 %v392_v27, %v390_v28  ;;  %v2623_v27 = vsel %vm814_vm9, 1.0, %v2415_v55  ;;  %vm817_vm9 = vmand %vm807_vm3, %vm813_vm8  ;;  %v711_v28 = vld [vmem:[#allocation2 + $0xa0] sm:$0xff]  ;;  %vm2773_vm3 = vcmp.lt.s32.totalorder %v2452_v1, 5 }
 0x4c9   :  { %v856_v38 = vpop.xlane.xlu1 %855  ;;  %v2643_v42 = vsel %vm817_vm9, 1.0, %v2415_v55 }
 0x4ca   :  { %vm394_vm11 = vcmp.eq.s32.totalorder %v2461_v3, %v393_v32  ;;  %v858_v41 = vcvt.f32.s32 %v856_v38  ;;  %v2239_v32 = vpack.c.bf16 %v713_v31, %v712_v29  ;;  %v716_v38 = vld [vmem:[#allocation2 + $0xc8] sm:$0xff] }
 0x4cb   :  { %v2581_v46 = vsel %vm394_vm11, 1.0, %v2415_v55  ;;  %vm805_vm11 = vcmp.ge.s32.totalorder %v2503_v43, %v803_v19  ;;  %v1228_v19 = vld [vmem:[#allocation2 + $0x160] sm:$0xff]  ;;  %v1338_v29 = vld [vmem:[#allocation2 + $0x188] sm:$0xff] }
 0x4cc   :  { %v859_v50 = vshll.u32 %v858_v41, 16  ;;  %1995 = vmatmul.mubr.msk.f32.vlgmr.msra.gmra.mrb[4].mxu1 %vm397_vm10, %v2581_v46  ;;  %vm815_vm15 = vmand %vm805_vm11, %vm811_vm12  ;;  %v718_v41 = vld [vmem:[#allocation2 + $0xd8] sm:$0xff]  ;;  %vm2771_vm11 = vcmp.eq.s32.totalorder %v2452_v1, 0 }
 0x4cd   :  { %2222 = vmatpush3.bf16.msra.mxu1 %v2221_v39  ;;  %v854_v53 = vpop.xlane.xlu1 %853  ;;  %2024 = vmatprep.mubr.msk.f32.mxu1 %vm2416_vm4, %v2415_v55  ;;  %vm920_vm4 = vcmask 1044480   ;;  %v717_v39 = vld [vmem:[#allocation2 + $0xd0] sm:$0xff]  ;;  %v2248_v45 = vpack.c.bf16 %v719_v44, %v718_v41  ;;  %v1345_v44 = vld [vmem:[#allocation2 + $0x1c0] sm:$0xff] }
 0x4ce   :  { %2223 = vmatprep.subr.bf16.mxu1 %v2414_v36  ;;  %v857_v56 = vcvt.f32.s32 %v854_v53  ;;  %v2245_v40 = vpack.c.bf16 %v717_v39, %v716_v38  ;;  %v722_v53 = vld [vmem:[#allocation2 + $0xf8] sm:$0xff]  ;;  %v1343_v39 = vld [vmem:[#allocation2 + $0x1b0] sm:$0xff] }
 0x4d0   :  { %v860_v62 = vadd.s32 %v859_v50, %v857_v56  ;;  %v1113_v50 = vld [vmem:[#allocation2 + $0x110] sm:$0xff]  ;;  %v723_v56 = vld [vmem:[#allocation2 + $0x100] sm:$0xff] }
 0x4d1   :  { %2225 = vmatpush3.bf16.msra.mxu1 %v2224_v54  ;;  %v883_v63 = vpop.xlane.xlu1 %882  ;;  %v2256_v54 = vpack.c.bf16 %v1114_v52, %v1113_v50  ;;  %v2254_v61 = vpack.c.bf16 %v723_v56, %v722_v53  ;;  %v1348_v50 = vld [vmem:[#allocation2 + $0x1d8] sm:$0xff]  ;;  %v1349_v52 = vld [vmem:[#allocation2 + $0x1e0] sm:$0xff]  ;;  %v1350_v53 = vld [vmem:[#allocation2 + $0x1e8] sm:$0xff] }
 0x4d2   :  { %2226 = vmatprep.subr.bf16.mxu1 %v2414_v36  ;;  %v885_v18 = vcvt.f32.s32 %v883_v63  ;;  %v889_v8 = vmul.u32 5, %v860_v62  ;;  %v1223_v62 = vld [vmem:[#allocation2 + $0x138] sm:$0xff]  ;;  %v1224_v63 = vld [vmem:[#allocation2 + $0x140] sm:$0xff]  ;;  %v1813_v56 = vld [vmem:[#allocation2 + $0x130] ss:$0 sm:$0xff] }
 0x4d4   :  { %v886_v9 = vshll.u32 %v885_v18, 16  ;;  %v893_v16 = vsub.s32 %v2503_v43, %v889_v8 }
 0x4d5   :  { %2228 = vmatpush3.bf16.msra.mxu1 %v2227_v0  ;;  %v881_v10 = vpop.xlane.xlu1 %880  ;;  %v2264_v0 = vpack.c.bf16 %v1224_v63, %v1223_v62 }
 0x4d6   :  { %2229 = vmatprep.subr.bf16.mxu1 %v2414_v36  ;;  %v884_v13 = vcvt.f32.s32 %v881_v10  ;;  %vm897_vm2 = vcmp.eq.s32.totalorder %v893_v16, %v2461_v3  ;;  %v1225_v10 = vld [vmem:[#allocation2 + $0x148] sm:$0xff] }
 0x4d7   :  { %v1800_v26 = vsel %vm897_vm2, 1.0, %v2415_v55  ;;  %vm816_vm2 = vmand %vm806_vm7, %vm812_vm1  ;;  %vm526_vm1 = vcmask 4096  }
 0x4d8   :  { %v887_v17 = vadd.s32 %v886_v9, %v884_v13  ;;  %v2636_v49 = vsel %vm816_vm2, 1.0, %v2415_v55 }
 0x4d9   :  { %2231 = vmatpush3.bf16.msra.mxu1 %v2230_v11  ;;  %v1226_v11 = vld [vmem:[#allocation2 + $0x150] sm:$0xff] }
 0x4da   :  { %v891_v20 = vmul.u32 5, %v887_v17  ;;  %2062 = vmatprep.subr.msk.mxu1 %vm920_vm4, %v800_v15  ;;  %v2268_v16 = vpack.c.bf16 %v1226_v11, %v1225_v10  ;;  %v1227_v17 = vld [vmem:[#allocation2 + $0x158] sm:$0xff] }
 0x4dc   :  { %v895_v23 = vsub.s32 %v2573_v60, %v891_v20  ;;  %2025 = vmatmul.mubr.msk.f32.vlgmr.msra.gmra.mrb[6].mxu1 %vm633_vm13, %v2351_v21  ;;  %v710_v60 = vld [vmem:[#allocation2 + $0x98] sm:$0xff]  ;;  %v2272_v21 = vpack.c.bf16 %v1228_v19, %v1227_v17 }
 0x4dd   :  { %2063 = vmatpush3.msk.msra.mxu1 %vm920_vm4, %v800_v15  ;;  %2064 = vmatprep.mubr.msk.f32.mxu1 %vm834_vm14, %v1799_v22  ;;  %v2236_v30 = vpack.c.bf16 %v711_v28, %v710_v60  ;;  %v1229_v22 = vld [vmem:[#allocation2 + $0x168] sm:$0xff]  ;;  %v1337_v28 = vld [vmem:[#allocation2 + $0x180] sm:$0xff] }
 0x4de   :  { %2070 = vmatprep.subr.msk.mxu1 %vm920_vm4, %v2534_v12  ;;  %vm899_vm0 = vcmp.eq.s32.totalorder %v895_v23, %v2461_v3  ;;  %v1230_v23 = vld [vmem:[#allocation2 + $0x170] sm:$0xff]  ;;  %v2280_v31 = vpack.c.bf16 %v1338_v29, %v1337_v28 }
 0x4df   :  { %v1802_v43 = vsel %vm899_vm0, 1.0, %v2415_v55  ;;  %2237 = vmatpush3.bf16.msra.mxu0 %v2236_v30  ;;  %v1339_v30 = vld [vmem:[#allocation2 + $0x190] sm:$0xff]  ;;  %vm1653_vm0 = vcmask 73728  }
 0x4e0   :  { %2065 = vmatmul.mubr.msk.f32.vlgmr.msra.gmra.mrb[8].mxu1 %vm834_vm14, %v1800_v26  ;;  %2238 = vmatprep.subr.bf16.mxu0 %v2414_v36  ;;  %v1447_v26 = vld [vmem:[#allocation2 + $0x208] sm:$0xff] }
 0x4e1   :  { %2071 = vmatpush3.msk.msra.mxu1 %vm920_vm4, %v2534_v12  ;;  %2067 = vmatprep.mubr.msk.f32.mxu1 %vm834_vm14, %v1801_v24  ;;  %v2633_v12 = vsel %vm815_vm15, 1.0, %v2415_v55  ;;  %v2276_v24 = vpack.c.bf16 %v1230_v23, %v1229_v22  ;;  %v1351_v22 = vld [vmem:[#allocation2 + $0x1f0] sm:$0xff]  ;;  %v1352_v23 = vld [vmem:[#allocation2 + $0x1f8] sm:$0xff]  ;;  %vm2772_vm15 = vmmov %vm2771_vm11 }
 0x4e2   :  { %2257 = vmatprep.subr.bf16.mxu1 %v2256_v54 }
 0x4e3   :  { %2240 = vmatpush3.bf16.msra.mxu0 %v2239_v32  ;;  %v1340_v32 = vld [vmem:[#allocation2 + $0x198] sm:$0xff] }
 0x4e4   :  { %2068 = vmatmul.mubr.msk.f32.gmra.mrb[10].mxu1 %vm834_vm14, %v1802_v43  ;;  %2241 = vmatprep.subr.bf16.mxu0 %v2414_v36  ;;  %v1448_v43 = vld [vmem:[#allocation2 + $0x210] sm:$0xff]  ;;  %v2284_v33 = vpack.c.bf16 %v1340_v32, %v1339_v30 }
 0x4e5   :  { %2072 = vmatprep.mubr.msk.f32.mxu1 %vm834_vm14, %v2623_v27  ;;  %v2312_v60 = vpack.c.bf16 %v1448_v43, %v1447_v26  ;;  %v1818_v26 = vld [vmem:[#allocation2 + $0x178] ss:$0 sm:$0xff] }
 0x4e7   :  { %2243 = vmatpush3.bf16.msra.mxu0 %v2242_v37  ;;  %v1342_v37 = vld [vmem:[#allocation2 + $0x1a8] sm:$0xff] }
 0x4e8   :  { %2073 = vmatmul.mubr.msk.f32.vlgmr.msra.gmra.mrb[8].mxu1 %vm834_vm14, %v2633_v12  ;;  %2244 = vmatprep.subr.bf16.mxu0 %v2414_v36  ;;  %v2288_v38 = vpack.c.bf16 %v1342_v37, %v1341_v35 }
 0x4e9   :  { %2075 = vmatprep.mubr.msk.f32.mxu1 %vm834_vm14, %v2636_v49  ;;  %2259 = vmatpush3.bf16.msra.mxu1 %v2256_v54  ;;  %v2304_v54 = vpack.c.bf16 %v1350_v53, %v1349_v52 }
 0x4ea   :  { %2261 = vmatprep.subr.bf16.mxu1 %v2260_v59 }
 0x4eb   :  { %2246 = vmatpush3.bf16.msra.mxu0 %v2245_v40  ;;  %v1344_v40 = vld [vmem:[#allocation2 + $0x1b8] sm:$0xff] }
 0x4ec   :  { %2076 = vmatmul.mubr.msk.f32.gmra.mrb[10].mxu1 %vm834_vm14, %v2643_v42  ;;  %2247 = vmatprep.subr.bf16.mxu0 %v2414_v36  ;;  %v2292_v41 = vpack.c.bf16 %v1344_v40, %v1343_v39  ;;  %v1823_v40 = vld [vmem:[#allocation2 + $0x200] ss:$0 sm:$0xff] }
 0x4ed   :  { %2263 = vmatpush3.bf16.msra.mxu1 %v2260_v59 }
 0x4ee   :  { %2265 = vmatprep.subr.bf16.mxu1 %v2264_v0 }
 0x4ef   :  { %2249 = vmatpush3.bf16.msra.mxu0 %v2248_v45  ;;  %v1346_v45 = vld [vmem:[#allocation2 + $0x1c8] sm:$0xff] }
 0x4f0   :  { %2250 = vmatprep.subr.bf16.mxu0 %v2414_v36  ;;  %v2296_v47 = vpack.c.bf16 %v1346_v45, %v1345_v44 }
 0x4f3   :  { %2252 = vmatpush3.bf16.msra.mxu0 %v2251_v51  ;;  %v2300_v51 = vpack.c.bf16 %v1348_v50, %v1347_v48 }
 0x4f4   :  { %2253 = vmatprep.subr.bf16.mxu0 %v2414_v36 }
 0x4f7   :  { %2255 = vmatpush3.bf16.msra.mxu0 %v2254_v61 }
 0x4f8   :  { %2281 = vmatprep.subr.bf16.mxu0 %v2280_v31 }
 0x59f   :  { %v2653_v18 = vpop.f32.mrb[4].mxu1 }
 0x5a0   :  { %v1996_v2 = vpop.f32.mrb[5].mxu1  ;;  %v2657_v5 = vmul.f32 %v2653_v18, %v2518_v4  ;;  %v2661_v6 = vsub.f32 %v2653_v18, %v2518_v4 }
 0x5a1   :  { %v1450_v2 = vld [vmem:[#allocation2 + $0x220] sm:$0xff] }
 0x5af   :  { %v703_v36 = vpop.f32.mrb[6].mxu1 }
 0x5b0   :  { %v704_v8 = vadd.f32 %v1792_v7, %v703_v36  ;;  %v2026_v9 = vpop.f32.mrb[7].mxu1 }
 0x5b2   :  { %2352 = vtanh.f32 %v704_v8 }
 0x5bb   :  { %v2074_v13 = vpop.f32.mrb[8].mxu1 }
 0x5bc   :  { %v2353_v14 = vpop.eup %2352  ;;  %v1094_v15 = vpop.f32.mrb[9].mxu1 }
 0x5bd   :  { %2060 = vmatmul.mubr.f32.vlgmr.msra.gmra.mrb[4].mxu0 %v2353_v14  ;;  %2086 = vmatprep.mubr.msk.f32.mxu1 %vm199_vm5, %v1094_v15  ;;  %v1451_v14 = vld [vmem:[#allocation2 + $0x228] sm:$0xff]  ;;  %v1452_v15 = vld [vmem:[#allocation2 + $0x230] sm:$0xff] }
 0x5be   :  { %2087 = vmatmul.mubr.msk.f32.vlgmr.msra.gmra.mrb[12].mxu1 %vm199_vm5, %v2074_v13  ;;  %2283 = vmatpush3.bf16.msra.mxu0 %v2280_v31  ;;  %v2320_v19 = vpack.c.bf16 %v1452_v15, %v1451_v14 }
 0x5bf   :  { %v2077_v4 = vpop.f32.mrb[10].mxu1  ;;  %2267 = vmatpush3.bf16.msra.mxu1 %v2264_v0  ;;  %2285 = vmatprep.subr.bf16.mxu0 %v2284_v33  ;;  %v1449_v0 = vld [vmem:[#allocation2 + $0x218] sm:$0xff] }
 0x5c0   :  { %v1104_v20 = vpop.f32.mrb[11].mxu1  ;;  %2269 = vmatprep.subr.bf16.mxu1 %v2268_v16  ;;  %v2316_v11 = vpack.c.bf16 %v1450_v2, %v1449_v0 }
 0x5c1   :  { %2089 = vmatprep.mubr.msk.f32.mxu1 %vm199_vm5, %v1104_v20  ;;  %v1454_v20 = vld [vmem:[#allocation2 + $0x240] sm:$0xff] }
 0x5c2   :  { %2090 = vmatmul.mubr.msk.f32.gmra.mrb[14].mxu1 %vm199_vm5, %v2077_v4  ;;  %2287 = vmatpush3.bf16.msra.mxu0 %v2284_v33  ;;  %v1453_v4 = vld [vmem:[#allocation2 + $0x238] sm:$0xff]  ;;  %vm2769_vm5 = vcmask 77824  }
 0x5c3   :  { %2271 = vmatpush3.bf16.msra.mxu1 %v2268_v16  ;;  %2289 = vmatprep.subr.bf16.mxu0 %v2288_v38  ;;  %vm2770_vm7 = vmmov %vm2769_vm5 }
 0x5c4   :  { %2273 = vmatprep.subr.bf16.mxu1 %v2272_v21 }
 0x5c6   :  { %2291 = vmatpush3.bf16.msra.mxu0 %v2288_v38 }
 0x5c7   :  { %2275 = vmatpush3.bf16.msra.mxu1 %v2272_v21  ;;  %2293 = vmatprep.subr.bf16.mxu0 %v2292_v41  ;;  %v2324_v21 = vpack.c.bf16 %v1454_v20, %v1453_v4 }
 0x5c8   :  { %2277 = vmatprep.subr.bf16.mxu1 %v2276_v24 }
 0x5ca   :  { %2295 = vmatpush3.bf16.msra.mxu0 %v2292_v41 }
 0x5cb   :  { %2279 = vmatpush3.bf16.msra.mxu1 %v2276_v24  ;;  %2297 = vmatprep.subr.bf16.mxu0 %v2296_v47  ;;  %v2308_v24 = vpack.c.bf16 %v1352_v23, %v1351_v22 }
 0x5cc   :  { %2313 = vmatprep.subr.bf16.mxu1 %v2312_v60 }
 0x5ce   :  { %2299 = vmatpush3.bf16.msra.mxu0 %v2296_v47 }
 0x5cf   :  { %2301 = vmatprep.subr.bf16.mxu0 %v2300_v51 }
 0x5d2   :  { %2303 = vmatpush3.bf16.msra.mxu0 %v2300_v51 }
 0x5d3   :  { %2305 = vmatprep.subr.bf16.mxu0 %v2304_v54 }
 0x5d6   :  { %2307 = vmatpush3.bf16.msra.mxu0 %v2304_v54 }
 0x5d7   :  { %2309 = vmatprep.subr.bf16.mxu0 %v2308_v24 }
 0x5da   :  { %2311 = vmatpush3.bf16.msra.mxu0 %v2308_v24 }
 0x690   :  { %v2667_v57 = vpop.f32.mrb[4].mxu0 }
 0x691   :  { %v2061_v58 = vpop.f32.mrb[5].mxu0  ;;  %v2088_v59 = vpop.f32.mrb[12].mxu1 }
 0x692   :  { %v1206_v61 = vadd.f32 %v2088_v59, %v1813_v56  ;;  %v1200_v62 = vpop.f32.mrb[13].mxu1  ;;  %v1824_v59 = vld [vmem:[#allocation2 + $0x248] ss:$0 sm:$0xff] }
 0x693   :  { %v1201_v63 = vadd.f32 %v1813_v56, %v1200_v62 }
 0x694   :  { %v1220_v8 = vmax.f32 %v1206_v61, 0.0 }
 0x695   :  { %v1219_v7 = vmax.f32 %v1201_v63, 0.0  ;;  %v2091_v36 = vpop.f32.mrb[14].mxu1 }
 0x696   :  { %v1216_v9 = vadd.f32 %v2091_v36, %v1813_v56  ;;  %v1210_v10 = vpop.f32.mrb[15].mxu1 }
 0x697   :  { %v1211_v13 = vadd.f32 %v1813_v56, %v1210_v10  ;;  %2108 = vmatprep.mubr.msk.f32.mxu1 %vm633_vm13, %v1219_v7  ;;  %v496_v10 = vmul.f32 %v2653_v18, %v2653_v18 }
 0x698   :  { %2109 = vmatmul.mubr.msk.f32.vlgmr.msra.gmra.mrb[16].mxu1 %vm633_vm13, %v1220_v8  ;;  %v1222_v17 = vmax.f32 %v1216_v9, 0.0 }
 0x699   :  { %v1221_v16 = vmax.f32 %v1211_v13, 0.0  ;;  %2315 = vmatpush3.bf16.msra.mxu1 %v2312_v60  ;;  %v497_v14 = vsel %vm280_vm6, %v496_v10, 0.0 }
 0x69a   :  { %2317 = vmatprep.subr.bf16.mxu1 %v2316_v11 }
 0x69b   :  { %2111 = vmatprep.mubr.msk.f32.mxu1 %vm633_vm13, %v1221_v16  ;;  %v488_v16 = vsel %vm2769_vm5, %v2581_v46, -inf }
 0x69c   :  { %2112 = vmatmul.mubr.msk.f32.gmra.mrb[18].mxu1 %vm633_vm13, %v1222_v17  ;;  %v489_v17 = vrot.slane %v488_v16, 4 }
 0x69d   :  { %2319 = vmatpush3.bf16.msra.mxu1 %v2316_v11 }
 0x69e   :  { %2321 = vmatprep.subr.bf16.mxu1 %v2320_v19  ;;  %v490_v24 = vmax.f32 %v488_v16, %v489_v17 }
 0x6a1   :  { %2323 = vmatpush3.bf16.msra.mxu1 %v2320_v19 }
 0x6a2   :  { %2325 = vmatprep.subr.bf16.mxu1 %v2324_v21 }
 0x6a5   :  { %2327 = vmatpush3.bf16.msra.mxu1 %v2324_v21 }
 0x6a6   :  { %2174 = vmatprep.subr.msk.mxu1 %vm920_vm4, %v2581_v46 }
 0x76b   :  { %v2110_v43 = vpop.f32.mrb[16].mxu1 }
 0x76c   :  { %v1320_v60 = vadd.f32 %v2110_v43, %v1818_v26  ;;  %v1314_v28 = vpop.f32.mrb[17].mxu1 }
 0x76d   :  { %v1315_v29 = vadd.f32 %v1818_v26, %v1314_v28 }
 0x76e   :  { %v1334_v32 = vmax.f32 %v1320_v60, 0.0 }
 0x76f   :  { %v1333_v30 = vmax.f32 %v1315_v29, 0.0  ;;  %v2113_v31 = vpop.f32.mrb[18].mxu1  ;;  %v491_v29 = vrot.slane %v490_v24, 2 }
 0x770   :  { %v1330_v33 = vadd.f32 %v2113_v31, %v1818_v26  ;;  %v1324_v35 = vpop.f32.mrb[19].mxu1 }
 0x771   :  { %v1325_v37 = vadd.f32 %v1818_v26, %v1324_v35  ;;  %2146 = vmatprep.mubr.f32.mxu0 %v1333_v30  ;;  %v515_v30 = vmul.f32 14.285714, %v2554_v34  ;;  %v492_v31 = vmax.f32 %v490_v24, %v491_v29 }
 0x772   :  { %2147 = vmatmul.mubr.f32.vlgmr.msra.gmra.mrb[6].mxu0 %v1334_v32  ;;  %v1336_v39 = vmax.f32 %v1330_v33, 0.0 }
 0x773   :  { %v1335_v38 = vmax.f32 %v1325_v37, 0.0  ;;  %v516_v32 = vmul.f32 1.442695, %v515_v30 }
 0x775   :  { %2149 = vmatprep.mubr.f32.mxu0 %v1335_v38  ;;  %v493_v38 = vrot.slane %v492_v31, 1 }
 0x776   :  { %2150 = vmatmul.mubr.f32.gmra.mrb[8].mxu0 %v1336_v39 }
 0x845   :  { %v2148_v41 = vpop.f32.mrb[6].mxu0 }
 0x846   :  { %v1430_v44 = vadd.f32 %v2148_v41, %v1823_v40  ;;  %v1424_v45 = vpop.f32.mrb[7].mxu0 }
 0x847   :  { %v1425_v47 = vadd.f32 %v1823_v40, %v1424_v45 }
 0x848   :  { %v1444_v51 = vmax.f32 %v1430_v44, 0.0 }
 0x849   :  { %v1443_v48 = vmax.f32 %v1425_v47, 0.0  ;;  %v2151_v50 = vpop.f32.mrb[8].mxu0  ;;  %v494_v47 = vmax.f32 %v492_v31, %v493_v38 }
 0x84a   :  { %v1440_v52 = vadd.f32 %v2151_v50, %v1823_v40  ;;  %v1434_v53 = vpop.f32.mrb[9].mxu0 }
 0x84b   :  { %v1435_v54 = vadd.f32 %v1823_v40, %v1434_v53  ;;  %2168 = vmatprep.mubr.msk.f32.mxu1 %vm633_vm13, %v1443_v48  ;;  %v501_v53 = vsel %vm280_vm6, %v2657_v5, 0.0 }
 0x84c   :  { %2169 = vmatmul.mubr.msk.f32.vlgmr.msra.gmra.mrb[20].mxu1 %vm633_vm13, %v1444_v51  ;;  %v1446_v58 = vmax.f32 %v1440_v52, 0.0  ;;  %v495_v51 = vsub.f32 1.0, %v494_v47 }
 0x84d   :  { %v1445_v56 = vmax.f32 %v1435_v54, 0.0  ;;  %2175 = vmatpush3.msk.msra.mxu1 %vm920_vm4, %v2581_v46  ;;  %vm1761_vm4 = vcmp.eq.s32.totalorder %v2461_v3, 1 }
 0x84e   :  { %vm1762_vm2 = vmand %vm2772_vm15, %vm1761_vm4 }
 0x84f   :  { %2171 = vmatprep.mubr.msk.f32.mxu1 %vm633_vm13, %v1445_v56 }
 0x850   :  { %2172 = vmatmul.mubr.msk.f32.gmra.mrb[22].mxu1 %vm633_vm13, %v1446_v58 }
 0x851   :  { %2176 = vmatprep.mubr.msk.f32.mxu1 %vm834_vm14, %v2623_v27 }
 0x854   :  { %2177 = vmatmul.mubr.msk.f32.vlgmr.msra.gmra.mrb[24].mxu1 %vm834_vm14, %v2633_v12 }
 0x855   :  { %2179 = vmatprep.mubr.msk.f32.mxu1 %vm834_vm14, %v2636_v49 }
 0x858   :  { %2180 = vmatmul.mubr.msk.f32.gmra.mrb[26].mxu1 %vm834_vm14, %v2643_v42  ;;  %vm1743_vm14 = vcmask 0  }
 0x91f   :  { %v2170_v61 = vpop.f32.mrb[20].mxu1 }
 0x920   :  { %v2689_v62 = vadd.f32 %v2170_v61, %v1824_v59  ;;  %v1538_v63 = vpop.f32.mrb[21].mxu1 }
 0x921   :  { %v1539_v0 = vadd.f32 %v1824_v59, %v1538_v63 }
 0x922   :  { %v1647_v2 = vsel %vm397_vm10, %v2689_v62, -inf }
 0x923   :  { %1648 = vmax.xlane.f32.xlu1 %v1647_v2  ;;  %v2173_v27 = vpop.f32.mrb[22].mxu1  ;;  %v1644_v7 = vsel %vm397_vm10, %v1539_v0, -inf }
 0x924   :  { %v2694_v12 = vadd.f32 %v2173_v27, %v1824_v59  ;;  %v1548_v49 = vpop.f32.mrb[23].mxu1  ;;  %1645 = vmax.xlane.f32.xlu0 %v1644_v7 }
 0x925   :  { %v1549_v36 = vadd.f32 %v1824_v59, %v1548_v49 }
 0x926   :  { %v1654_v42 = vsel %vm1653_vm0, %v2694_v12, -inf }
 0x927   :  { %1655 = vmax.xlane.f32.xlu1 %v1654_v42  ;;  %v2178_v8 = vpop.f32.mrb[24].mxu1  ;;  %v1650_v9 = vsel %vm397_vm10, %v1549_v36, -inf }
 0x928   :  { %v1625_v11 = vpop.f32.mrb[25].mxu1  ;;  %1651 = vmax.xlane.f32.xlu0 %v1650_v9  ;;  %v1694_v52 = vmul.f32 %v2178_v8, %v2689_v62 }
 0x929   :  { %v1693_v44 = vmul.f32 %v1625_v11, %v1539_v0 }
 0x92a   :  { %v1700_v61 = vsel %vm397_vm10, %v1694_v52, 0.0 }
 0x92b   :  { %v2181_v13 = vpop.f32.mrb[26].mxu1  ;;  %v1697_v50 = vsel %vm397_vm10, %v1693_v44, 0.0 }
 0x92c   :  { %v1635_v15 = vpop.f32.mrb[27].mxu1  ;;  %498 = vadd.xlane.f32.xlu0 %v497_v14  ;;  %v1696_v59 = vmul.f32 %v2181_v13, %v2694_v12 }
 0x92d   :  { %v1695_v48 = vmul.f32 %v1635_v15, %v1549_v36 }
 0x92f   :  { %v1703_v56 = vsel %vm397_vm10, %v1695_v48, 0.0 }
 0x9b0   :  { %v2704_v19 = vpop.xlane.xlu1 %1648 }
 0x9b1   :  { %v1658_v4 = vsub.f32 %v2689_v62, %v2704_v19  ;;  %v2708_v20 = vpop.xlane.xlu0 %1645  ;;  %v1706_v62 = vsel %vm1653_vm0, %v1696_v59, 0.0 }
 0x9b2   :  { %v1657_v18 = vsub.f32 %v1539_v0, %v2708_v20  ;;  %v475_v0 = vmul.f32 %v2661_v6, %v2661_v6 }
 0x9b3   :  { %v1663_v21 = vmul.f32 1.442695, %v1658_v4 }
 0x9b4   :  { %v1661_v22 = vmul.f32 1.442695, %v1657_v18  ;;  %v2711_v23 = vpop.xlane.xlu1 %1655  ;;  %v476_v5 = vsel %vm280_vm6, %v475_v0, 0.0  ;;  %vm1737_vm6 = vcmask 7168  }
 0x9b5   :  { %2354 = vpow2.f32 %v1663_v21  ;;  %v1660_v26 = vsub.f32 %v2694_v12, %v2711_v23  ;;  %v2715_v46 = vpop.xlane.xlu0 %1651 }
 0x9b6   :  { %2356 = vpow2.f32 %v1661_v22  ;;  %v1659_v43 = vsub.f32 %v1549_v36, %v2715_v46 }
 0x9b7   :  { %v1667_v60 = vmul.f32 1.442695, %v1660_v26 }
 0x9b8   :  { %v1665_v28 = vmul.f32 1.442695, %v1659_v43 }
 0x9b9   :  { %2358 = vpow2.f32 %v1667_v60  ;;  %v499_v2 = vpop.xlane.xlu0 %498 }
 0x9ba   :  { %2360 = vpow2.f32 %v1665_v28  ;;  %v504_v27 = vmul.f32 %v499_v2, %v2549_v25 }
 0x9bb   :  { %2362 = vpow2.f32 %v516_v32 }
 0x9bc   :  { %v505_v7 = vmax.f32 %v504_v27, 1e-16 }
 0x9be   :  { %2364 = vrsqrt.f32 %v505_v7 }
 0x9bf   :  { %v2355_v33 = vpop.eup %2354 }
 0x9c0   :  { %v2357_v35 = vpop.eup %2356  ;;  %v1672_v37 = vsel %vm397_vm10, %v2355_v33, 0.0 }
 0x9c1   :  { %1673 = vadd.xlane.f32.xlu0 %v1672_v37  ;;  %v1669_v39 = vsel %vm397_vm10, %v2357_v35, 0.0 }
 0x9c2   :  { %1670 = vadd.xlane.f32.xlu1 %v1669_v39 }
 0x9c3   :  { %v2359_v40 = vpop.eup %2358 }
 0x9c4   :  { %v2361_v41 = vpop.eup %2360  ;;  %v1678_v45 = vsel %vm1653_vm0, %v2359_v40, 0.0 }
 0x9c5   :  { %1679 = vadd.xlane.f32.xlu0 %v1678_v45  ;;  %v1675_v34 = vsel %vm397_vm10, %v2361_v41, 0.0  ;;  %v2363_v54 = vpop.eup %2362  ;;  %vm1757_vm10 = vcmp.eq.s32.totalorder %v2461_v3, 0 }
 0x9c6   :  { %1676 = vadd.xlane.f32.xlu1 %v1675_v34  ;;  %v518_v58 = vmul.f32 %v2363_v54, %v495_v51  ;;  %vm1758_vm12 = vmand %vm2771_vm11, %vm1757_vm10 }
 0x9c8   :  { %v519_v63 = vsel %vm2770_vm7, %v518_v58, 0.0  ;;  %v2365_v8 = vpop.eup %2364 }
 0x9c9   :  { %1698 = vadd.xlane.f32.xlu0 %v1697_v50 }
 0x9ca   :  { %502 = vadd.xlane.f32.xlu1 %v501_v53 }
 0x9cd   :  { %1704 = vadd.xlane.f32.xlu0 %v1703_v56 }
 0x9ce   :  { %1701 = vadd.xlane.f32.xlu1 %v1700_v61 }
 0x9d1   :  { %520 = vadd.xlane.f32.xlu0 %v519_v63 }
 0x9d2   :  { %1707 = vadd.xlane.f32.xlu1 %v1706_v62 }
 0x9d6   :  { %477 = vadd.xlane.f32.xlu1 %v476_v5 }
 0xa4e   :  { %v1674_v12 = vpop.xlane.xlu0 %1673 }
 0xa4f   :  { %2366 = vlog2.f32 %v1674_v12  ;;  %v1671_v49 = vpop.xlane.xlu1 %1670 }
 0xa50   :  { %2368 = vlog2.f32 %v1671_v49 }
 0xa52   :  { %v1680_v36 = vpop.xlane.xlu0 %1679 }
 0xa53   :  { %2370 = vlog2.f32 %v1680_v36  ;;  %v1677_v42 = vpop.xlane.xlu1 %1676 }
 0xa54   :  { %2372 = vlog2.f32 %v1677_v42 }
 0xa56   :  { %v1699_v16 = vpop.xlane.xlu0 %1698 }
 0xa57   :  { %v503_v9 = vpop.xlane.xlu1 %502 }
 0xa58   :  { %v507_v6 = vmul.f32 %v2365_v8, %v503_v9 }
 0xa59   :  { %v2367_v10 = vpop.eup %2366 }
 0xa5a   :  { %v2369_v11 = vpop.eup %2368  ;;  %v1684_v13 = vmul.f32 0.6931472, %v2367_v10  ;;  %v2736_v14 = vmul.f32 14.285714, %v507_v6  ;;  %v1705_v33 = vpop.xlane.xlu0 %1704 }
 0xa5b   :  { %v1682_v15 = vmul.f32 0.6931472, %v2369_v11  ;;  %v1702_v25 = vpop.xlane.xlu1 %1701 }
 0xa5c   :  { %v513_v17 = vmul.f32 1.442695, %v2736_v14  ;;  %v1690_v4 = vadd.f32 %v1684_v13, %v2704_v19 }
 0xa5d   :  { %v2371_v18 = vpop.eup %2370  ;;  %v1689_v21 = vadd.f32 %v1682_v15, %v2708_v20 }
 0xa5e   :  { %v2373_v22 = vpop.eup %2372  ;;  %v1688_v24 = vmul.f32 0.6931472, %v2371_v18  ;;  %2374 = vpow2.f32 %v513_v17  ;;  %v1710_v26 = vsub.f32 %v1690_v4, %v1702_v25  ;;  %v521_v48 = vpop.xlane.xlu0 %520 }
 0xa5f   :  { %v1686_v43 = vmul.f32 0.6931472, %v2373_v22  ;;  %v1709_v60 = vsub.f32 %v1689_v21, %v1699_v16  ;;  %v1708_v28 = vpop.xlane.xlu1 %1707 }
 0xa60   :  { %v1714_v29 = vsub.f32 0.0, %v1710_v26  ;;  %v1692_v30 = vadd.f32 %v1688_v24, %v2711_v23 }
 0xa61   :  { %v1713_v31 = vsub.f32 0.0, %v1709_v60  ;;  %v1691_v32 = vadd.f32 %v1686_v43, %v2715_v46 }
 0xa62   :  { %v1719_v35 = vmul.f32 1.442695, %v1714_v29  ;;  %v1712_v37 = vsub.f32 %v1692_v30, %v1708_v28 }
 0xa63   :  { %v1717_v19 = vmul.f32 1.442695, %v1713_v31  ;;  %v1711_v38 = vsub.f32 %v1691_v32, %v1705_v33  ;;  %v478_v39 = vpop.xlane.xlu1 %477 }
 0xa64   :  { %2376 = vpow2.f32 %v1719_v35  ;;  %v1716_v20 = vsub.f32 0.0, %v1712_v37  ;;  %v479_v40 = vrot.slane %v478_v39, 4 }
 0xa65   :  { %2378 = vpow2.f32 %v1717_v19  ;;  %v1715_v41 = vsub.f32 0.0, %v1711_v38 }
 0xa66   :  { %v1723_v44 = vmul.f32 1.442695, %v1716_v20  ;;  %v480_v45 = vadd.f32 %v479_v40, %v478_v39  ;;  %v1759_v39 = vsel %vm1758_vm12, 1.0, %v2415_v55  ;;  %v1763_v40 = vsel %vm1762_vm2, 1.0, %v2415_v55 }
 0xa67   :  { %v1721_v47 = vmul.f32 1.442695, %v1715_v41 }
 0xa68   :  { %v2375_v34 = vpop.eup %2374  ;;  %2380 = vpow2.f32 %v1723_v44  ;;  %v481_v23 = vrot.slane %v480_v45, 2 }
 0xa69   :  { %2382 = vpow2.f32 %v1721_v47  ;;  %v522_v46 = vadd.f32 %v2375_v34, %v521_v48  ;;  %v1794_v47 = vld [vmem:[#allocation2 + $0x108] ss:$0 sm:$0xff] }
 0xa6a   :  { %v482_v50 = vadd.f32 %v481_v23, %v480_v45  ;;  %v796_v34 = vadd.f32 %v1794_v47, %v2667_v57 }
 0xa6b   :  { %2384 = vlog2.f32 %v522_v46 }
 0xa6c   :  { %v483_v51 = vrot.slane %v482_v50, 1  ;;  %v799_v48 = vsel %vm2773_vm3, %v796_v34, 0.0 }
 0xa6e   :  { %v2377_v52 = vpop.eup %2376  ;;  %v484_v53 = vadd.f32 %v483_v51, %v482_v50 }
 0xa6f   :  { %v2379_v54 = vpop.eup %2378  ;;  %v1726_v56 = vsub.f32 1.0, %v2377_v52 }
 0xa70   :  { %v1725_v58 = vsub.f32 1.0, %v2379_v54  ;;  %2332 = vpush %v484_v53 }
 0xa71   :  { %v1730_v59 = vmul.f32 %v1726_v56, %v1726_v56 }
 0xa72   :  { %v2381_v61 = vpop.eup %2380  ;;  %v1729_v63 = vmul.f32 %v1725_v58, %v1725_v58 }
 0xa73   :  { %v2383_v62 = vpop.eup %2382  ;;  %v1734_v0 = vmul.f32 %v1730_v59, %v1710_v26  ;;  %v1728_v5 = vsub.f32 1.0, %v2381_v61 }
 0xa74   :  { %v1733_v2 = vmul.f32 %v1729_v63, %v1709_v60  ;;  %v1727_v27 = vsub.f32 1.0, %v2383_v62 }
 0xa75   :  { %v2385_v7 = vpop.eup %2384  ;;  %v1732_v12 = vmul.f32 %v1728_v5, %v1728_v5  ;;  %v1739_v42 = vsel %vm1737_vm6, %v1734_v0, 0.0 }
 0xa76   :  { %v1738_v49 = vsel %vm1737_vm6, %v1733_v2, 0.0  ;;  %v1731_v36 = vmul.f32 %v1727_v27, %v1727_v27  ;;  %v524_v8 = vmul.f32 0.6931472, %v2385_v7 }
 0xa77   :  { %v1736_v6 = vmul.f32 %v1732_v12, %v1712_v37  ;;  %v1740_v11 = vadd.f32 %v1739_v42, %v1738_v49 }
 0xa78   :  { %v1735_v9 = vmul.f32 %v1731_v36, %v1711_v38  ;;  %v525_v10 = vsub.f32 %v524_v8, %v2736_v14 }
 0xa79   :  { %v1744_v16 = vsel %vm1743_vm14, %v1736_v6, 0.0 }
 0xa7a   :  { %v527_v13 = vsel %vm526_vm1, %v525_v10, 0.0  ;;  %v1741_v15 = vsel %vm1737_vm6, %v1735_v9, 0.0 }
 0xa7b   :  { %528 = vadd.xlane.f32.xlu0 %v527_v13  ;;  %v1742_v25 = vadd.f32 %v1741_v15, %v1740_v11 }
 0xa7d   :  { %v1745_v17 = vadd.f32 %v1744_v16, %v1742_v25 }
 0xa7f   :  { %1746 = vadd.xlane.f32.xlu1 %v1745_v17 }
 0xaa1   :  { %s2333_s1 = spop %2332 }
 0xaa2   :  { %v486_v33 = vstv %s2333_s1 }
 0xaa3   :  { %v487_v37 = vmul.f32 0.00625, %v486_v33 }
 0xb08   :  { %v529_v4 = vpop.xlane.xlu0 %528 }
 0xb09   :  { %v530_v18 = vrot.slane %v529_v4, 4 }
 0xb0b   :  { %v531_v21 = vadd.f32 %v530_v18, %v529_v4 }
 0xb0c   :  { %v1747_v22 = vpop.xlane.xlu1 %1746 }
 0xb0d   :  { %v532_v24 = vrot.slane %v531_v21, 2  ;;  %v1748_v26 = vrot.slane %v1747_v22, 4 }
 0xb0f   :  { %v1749_v43 = vadd.f32 %v1748_v26, %v1747_v22  ;;  %v533_v60 = vadd.f32 %v532_v24, %v531_v21 }
 0xb11   :  { %v1750_v28 = vrot.slane %v1749_v43, 2  ;;  %v534_v14 = vrot.slane %v533_v60, 1 }
 0xb13   :  { %v1751_v29 = vadd.f32 %v1750_v28, %v1749_v43  ;;  %v535_v30 = vadd.f32 %v534_v14, %v533_v60 }
 0xb15   :  { %2334 = vpush %v535_v30  ;;  %v1752_v31 = vrot.slane %v1751_v29, 1 }
 0xb17   :  { %v1753_v32 = vadd.f32 %v1752_v31, %v1751_v29 }
 0xb19   :  { %2336 = vpush %v1753_v32 }
 0xb46   :  { %s2335_s21 = spop %2334 }
 0xb47   :  { %v537_v35 = vstv %s2335_s21 }
 0xb48   :  { %v538_v19 = vmul.f32 0.2, %v537_v35 }
 0xb4a   :  { %v539_v38 = vadd.f32 %v538_v19, %v487_v37  ;;  %s2337_s22 = spop %2336 }
 0xb4b   :  { %v1755_v20 = vstv %s2337_s22 }
 0xb4c   :  { %v1756_v41 = vmul.f32 0.04, %v1755_v20  ;;  %v1760_v44 = vmul.f32 %v1759_v39, %v539_v38 }
 0xb4e   :  { %v1764_v3 = vmul.f32 %v1763_v40, %v1756_v41 }
 0xb50   :  { %v1765_v45 = vadd.f32 %v1764_v3, %v1760_v44 }
 0xb52   :  { %1767 = vrot.lane.b32.xlu0 %v1765_v45, %s2419_s23 }
 0xbc4   :  { %v1768_v23 = vpop.permute.xlu0 %1767 }
 0xbc5   :  { %v1770_v46 = vsel %vm633_vm13, %v799_v48, %v1768_v23 }
 0xbc6   :  { %1771 = vst [vmem:[%s2765_s3] sm:$0xff] %v1770_v46 }
 0xbc7   :  { %1776 = vsyncpa [#allocation3], 1 }

</bundles_post_ra>
